<compile_context>
chip_gen: v6e
topology: v6e:2x2x1
jax: 0.10.0
libtpu: 0.0.40
codegen_flags: <defaults>
</compile_context>

<pallas_src>
import functools

import jax
import jax.numpy as jnp
from jax.experimental import pallas as pl
from jax.experimental.pallas import tpu as pltpu


# ----------------------------------------------------------------------------- kernel A
def ypred_kernel(dtd_ref, cost_ref, yp_ref):
    """y_pred = softmax(BatchNorm1d(train, identity affine)(dtd @ (2 - cost)))."""
    dpara = 2.0 - cost_ref[...]                                                # [K, V]
    logits = jnp.dot(dtd_ref[...], dpara, preferred_element_type=jnp.float32)  # [B, V]
    mean = jnp.mean(logits, axis=0, keepdims=True)
    var = jnp.mean((logits - mean) ** 2, axis=0, keepdims=True)                # biased (train-mode BN)
    z = (logits - mean) * jax.lax.rsqrt(var + 1e-5)
    z = z - jnp.max(z, axis=-1, keepdims=True)
    e = jnp.exp(z)
    yp_ref[...] = e / jnp.sum(e, axis=-1, keepdims=True)


# ----------------------------------------------------------------------------- kernel B
def loss_kernel(dtd_ref, yp_ref, yt_ref, att_ref, h_ref, ht_ref, hc_ref,
                loss_ref, *, S, num_ot_iter, reg_ot, inv_batch):
    @pl.when(pl.program_id(0) == 0)
    def _init():
        loss_ref[...] = jnp.zeros_like(loss_ref)

    dtd_blk = dtd_ref[...]            # [B_blk, K]  f32
    yp_blk = yp_ref[...]              # [B_blk, V]  f32
    yt = yt_ref[...]                  # [N_blk, V]  f32  (N_blk = B_blk * S)
    att = att_ref[...]                # [N_blk, 1]  f32
    h = h_ref[...]                    # [K, V]      bf16 (resident)
    ht = ht_ref[...]                  # [V, K]      bf16 (resident, transpose hoisted to wrapper)
    hc = hc_ref[...]                  # [K, V]      bf16 (resident, h * cost)

    B_blk, K = dtd_blk.shape
    N_blk, V = yt.shape

    # 0/1 selection matrix mapping neighbor row n -> doc row n // S (no int-div, no reshapes).
    n_idx = jax.lax.broadcasted_iota(jnp.int32, (N_blk, B_blk), 0)
    b_idx = jax.lax.broadcasted_iota(jnp.int32, (N_blk, B_blk), 1)
    lo = b_idx * S
    sel = jnp.logical_and(n_idx >= lo, n_idx < lo + S).astype(jnp.float32)     # [N_blk, B_blk]

    # ---------- reconstruction: fold neighbors with attention, then dot with log(y_pred) ----------
    log_yp = jnp.log(yp_blk + 1e-12)                                           # [B_blk, V]
    # yw[b, v] = sum_s att[b*S+s] * y_true[b*S+s, v]
    yw = jax.lax.dot_general(sel * att, yt,
                             dimension_numbers=(((0,), (0,)), ((), ())),
                             preferred_element_type=jnp.float32)               # [B_blk, V]
    recon_rows = -jnp.sum(yw * log_yp, axis=-1, keepdims=True)                 # [B_blk, 1]
    recon_11 = jnp.sum(recon_rows, axis=0, keepdims=True)                      # (1, 1)

    # ---------- optimal transport (Sinkhorn) ----------
    # d2 = softmax(softmax(y_true)); inner softmax result is already in [0,1] so the outer
    # softmax needs no max-shift.
    m = jnp.max(yt, axis=-1, keepdims=True)
    e1 = jnp.exp(yt - m)
    sm1 = e1 * pl.reciprocal(jnp.sum(e1, axis=-1, keepdims=True), approx=True)
    e2 = jnp.exp(sm1)
    d2 = e2 * pl.reciprocal(jnp.sum(e2, axis=-1, keepdims=True), approx=True)  # [N_blk, V]

    # doc_topic rows repeated S consecutive times, built in-kernel (no HBM dtd_rep).
    d1 = jnp.dot(sel, dtd_blk, preferred_element_type=jnp.float32)             # [N_blk, K]

    psi_1 = jnp.full((N_blk, K), 1.0 / K, dtype=jnp.float32)
    psi_2 = jnp.full((N_blk, V), 1.0 / V, dtype=jnp.float32)
    for _ in range(num_ot_iter):                                               # statically unrolled
        t2 = jnp.dot(psi_1.astype(jnp.bfloat16), h, preferred_element_type=jnp.float32)
        psi_2 = d2 * pl.reciprocal(t2 + 1e-12, approx=True)
        t1 = jnp.dot(psi_2.astype(jnp.bfloat16), ht, preferred_element_type=jnp.float32)
        psi_1 = d1 * pl.reciprocal(t1 + 1e-12, approx=True)

    plan = jnp.dot(psi_1.astype(jnp.bfloat16), hc, preferred_element_type=jnp.float32)
    ot_rows = jnp.sum(plan * psi_2, axis=-1, keepdims=True)                    # [N_blk, 1]
    ot_11 = jnp.sum(att * ot_rows, axis=0, keepdims=True)                      # (1, 1)

    loss_ref[...] += (recon_11 + reg_ot * ot_11) * inv_batch


# ----------------------------------------------------------------------------- wrapper
def _choose_block_docs(B, S, target_rows=512):
    cands = [d for d in range(1, B + 1) if B % d == 0 and (d % 8 == 0 or d == B)]
    fitting = [d for d in cands if d * S <= target_rows]
    return max(fitting) if fitting else min(cands)


def decoder_forward(doc_topic_dist, y_true, cost_matrix, att, *,
                    num_sampled_neighbors, num_ot_iter, reg_ot, gamma=20.0,
                    block_docs=None):
    B, K = doc_topic_dist.shape
    N, V = y_true.shape
    S = num_sampled_neighbors
    assert N == B * S and att.shape == (B, S) and cost_matrix.shape == (K, V)

    dtd = doc_topic_dist.astype(jnp.float32)
    yt = y_true.astype(jnp.float32)
    cost = cost_matrix.astype(jnp.float32)
    att_flat = att.reshape(N, 1).astype(jnp.float32)

    # ---------------- kernel A: y_pred (full-batch BatchNorm statistics) ----------------
    y_pred = pl.pallas_call(
        ypred_kernel,
        out_shape=jax.ShapeDtypeStruct((B, V), jnp.float32),
        grid=(1,),
        in_specs=[pl.BlockSpec((B, K), lambda i: (0, 0)),
                  pl.BlockSpec((K, V), lambda i: (0, 0))],
        out_specs=pl.BlockSpec((B, V), lambda i: (0, 0)),
        compiler_params=pltpu.CompilerParams(dimension_semantics=("arbitrary",)),
    )(dtd, cost)

    # Tiny [K,V] Sinkhorn constants computed once; the transpose is hoisted here so the
    # (unrolled) Sinkhorn loop never re-transposes. bf16 halves their resident VMEM and
    # feeds the MXU at its bf16 rate; accumulation stays f32 in-kernel.
    h = jnp.exp(-cost * gamma)
    h_bf = h.astype(jnp.bfloat16)
    ht_bf = h.T.astype(jnp.bfloat16)
    hc_bf = (h * cost).astype(jnp.bfloat16)

    if block_docs is None:
        block_docs = _choose_block_docs(B, S)
    assert B % block_docs == 0 and (block_docs % 8 == 0 or block_docs == B)
    n_blk = block_docs * S
    grid = (B // block_docs,)

    kernel = functools.partial(loss_kernel, S=S, num_ot_iter=int(num_ot_iter),
                               reg_ot=float(reg_ot), inv_batch=1.0 / B)

    loss = pl.pallas_call(
        kernel,
        out_shape=jax.ShapeDtypeStruct((1, 1), jnp.float32),
        grid=grid,
        in_specs=[
            pl.BlockSpec((block_docs, K), lambda i: (i, 0)),   # doc_topic_dist block
            pl.BlockSpec((block_docs, V), lambda i: (i, 0)),   # y_pred block
            pl.BlockSpec((n_blk, V), lambda i: (i, 0)),        # y_true block (streamed)
            pl.BlockSpec((n_blk, 1), lambda i: (i, 0)),        # attention (flattened)
            pl.BlockSpec((K, V), lambda i: (0, 0)),            # h          (resident)
            pl.BlockSpec((V, K), lambda i: (0, 0)),            # h^T        (resident)
            pl.BlockSpec((K, V), lambda i: (0, 0)),            # h * cost   (resident)
        ],
        out_specs=pl.BlockSpec((1, 1), lambda i: (0, 0)),      # loss accumulator (resident)
        compiler_params=pltpu.CompilerParams(
            dimension_semantics=("arbitrary",),
            vmem_limit_bytes=64 * 1024 * 1024),
    )(dtd, y_pred, yt, att_flat, h_bf, ht_bf, hc_bf)

    return loss[0, 0], y_pred


# ----------------------------------------------------------------------------- reference
def decoder_forward_ref(doc_topic_dist, y_true, cost_matrix, att, *,
                        num_sampled_neighbors, num_ot_iter, reg_ot, gamma=20.0):
    """Pure-JAX reference mirroring the PyTorch forward pass."""
    B, K = doc_topic_dist.shape
    N, V = y_true.shape
    S = num_sampled_neighbors
    dpara = 2.0 - cost_matrix
    logits = jnp.matmul(doc_topic_dist, dpara, precision="highest")
    mean = logits.mean(0, keepdims=True)
    var = ((logits - mean) ** 2).mean(0, keepdims=True)
    y_pred = jax.nn.softmax((logits - mean) / jnp.sqrt(var + 1e-5), axis=-1)
    y_pred_rep = jnp.reshape(jnp.broadcast_to(y_pred[:, None, :], (B, S, V)), (N, V))
    recon = -jnp.sum(y_true * jnp.log(y_pred_rep + 1e-12), -1).reshape(B, S)
    recon_loss = jnp.mean(jnp.sum(att * recon, -1))

    d2 = jax.nn.softmax(jax.nn.softmax(y_true, -1), -1)
    d1 = jnp.repeat(doc_topic_dist, S, axis=0)
    h = jnp.exp(-cost_matrix * gamma)
    psi_1 = jnp.full_like(d1, 1.0 / K)
    psi_2 = jnp.full_like(d2, 1.0 / V)
    for _ in range(num_ot_iter):
        psi_2 = d2 * (1.0 / (psi_1 @ h + 1e-12))
        psi_1 = d1 * (1.0 / (psi_2 @ h.T + 1e-12))
    ot = jnp.sum((psi_1 @ (h * cost_matrix)) * psi_2, -1).reshape(B, S)
    ot_loss = jnp.mean(jnp.sum(att * ot, -1))
    return recon_loss + reg_ot * ot_loss, y_pred


# ----------------------------------------------------------------------------- main
if __name__ == "__main__":
    # small, deterministic, (8,128)-friendly configuration
    B, S, K, V = 16, 4, 16, 256        # docs, sampled neighbors, num_topics, vocab
    N = B * S
    num_ot_iter = 5
    reg_ot = 0.1

    key = jax.random.PRNGKey(0)
    k1, k2, k3, k4 = jax.random.split(key, 4)
    doc_topic_dist = jax.nn.softmax(jax.random.normal(k1, (B, K)), axis=-1).astype(jnp.float32)
    y_true = jax.random.uniform(k2, (N, V), dtype=jnp.float32)
    cost_matrix = jax.random.uniform(k3, (K, V), dtype=jnp.float32)
    att = jax.nn.softmax(jax.random.normal(k4, (B, S)), axis=-1).astype(jnp.float32)

    fwd = jax.jit(functools.partial(
        decoder_forward, num_sampled_neighbors=S, num_ot_iter=num_ot_iter,
        reg_ot=reg_ot, block_docs=8))
    loss, y_pred = fwd(doc_topic_dist, y_true, cost_matrix, att)
    jax.block_until_ready((loss, y_pred))

    loss_ref, y_pred_ref = decoder_forward_ref(
        doc_topic_dist, y_true, cost_matrix, att,
        num_sampled_neighbors=S, num_ot_iter=num_ot_iter, reg_ot=reg_ot)

    # y_pred path is pure f32 -> tight check; loss tolerance absorbs the bf16 Sinkhorn
    # operands and approx reciprocals (ot term is reg_ot-scaled, recon dominates).
    assert jnp.allclose(y_pred, y_pred_ref, rtol=1e-3, atol=1e-3)
    assert jnp.allclose(loss, loss_ref, rtol=2e-3, atol=2e-3), (loss, loss_ref)
    print("KERNEL_OK")
</pallas_src>

<mosaic_0001>
module attributes {stable_mosaic.version = 11 : i64} {
  func.func @ypred_kernel(%arg0: i32, %arg1: memref<16x16xf32, #tpu.memory_space<vmem>>, %arg2: memref<16x256xf32, #tpu.memory_space<vmem>>, %arg3: memref<16x256xf32, #tpu.memory_space<vmem>>) attributes {dimension_semantics = [#tpu.dimension_semantics<arbitrary>], iteration_bounds = array<i64: 1>, scalar_prefetch = 0 : i64, scratch_operands = 0 : i64, tpu.core_type = #tpu.core_type<tc>, window_params = [{pipeline_mode = #tpu.pipeline_mode<synchronous>, transform_indices = @transform_0, window_bounds = array<i64: 16, 16>}, {pipeline_mode = #tpu.pipeline_mode<synchronous>, transform_indices = @transform_1, window_bounds = array<i64: 16, 256>}, {pipeline_mode = #tpu.pipeline_mode<synchronous>, transform_indices = @transform_2, window_bounds = array<i64: 16, 256>}]} {
    %c0 = arith.constant 0 : index
    %c0_0 = arith.constant 0 : index
    %0 = vector.load %arg2[%c0, %c0_0] : memref<16x256xf32, #tpu.memory_space<vmem>>, vector<16x256xf32>
    %cst = arith.constant 2.000000e+00 : f32
    %1 = vector.broadcast %cst : f32 to vector<16x256xf32>
    %2 = arith.subf %1, %0 : vector<16x256xf32>
    %c0_1 = arith.constant 0 : index
    %c0_2 = arith.constant 0 : index
    %3 = vector.load %arg1[%c0_1, %c0_2] : memref<16x16xf32, #tpu.memory_space<vmem>>, vector<16x16xf32>
    %cst_3 = arith.constant dense<0.000000e+00> : vector<16x256xf32>
    %4 = tpu.matmul %3, %2, %cst_3 {dimension_numbers = #tpu.dot_dimension_numbers<[1], [0], [0], [1], [0, 0, 1, 1], [], []>} : vector<16x16xf32>, vector<16x256xf32>, vector<16x256xf32> -> vector<16x256xf32>
    %cst_4 = arith.constant dense<0.000000e+00> : vector<256xf32>
    %5 = vector.multi_reduction <add>, %4, %cst_4 [0] : vector<16x256xf32> to vector<256xf32>
    %6 = vector.shape_cast %5 : vector<256xf32> to vector<1x256xf32>
    %cst_5 = arith.constant 1.600000e+01 : f32
    %7 = vector.broadcast %cst_5 : f32 to vector<1x256xf32>
    %8 = arith.divf %6, %7 : vector<1x256xf32>
    %9 = vector.broadcast %8 : vector<1x256xf32> to vector<16x256xf32>
    %10 = arith.subf %4, %9 : vector<16x256xf32>
    %11 = arith.mulf %10, %10 : vector<16x256xf32>
    %cst_6 = arith.constant dense<0.000000e+00> : vector<256xf32>
    %12 = vector.multi_reduction <add>, %11, %cst_6 [0] : vector<16x256xf32> to vector<256xf32>
    %13 = vector.shape_cast %12 : vector<256xf32> to vector<1x256xf32>
    %cst_7 = arith.constant 1.600000e+01 : f32
    %14 = vector.broadcast %cst_7 : f32 to vector<1x256xf32>
    %15 = arith.divf %13, %14 : vector<1x256xf32>
    %16 = vector.broadcast %8 : vector<1x256xf32> to vector<16x256xf32>
    %17 = arith.subf %4, %16 : vector<16x256xf32>
    %cst_8 = arith.constant 9.99999974E-6 : f32
    %18 = vector.broadcast %cst_8 : f32 to vector<1x256xf32>
    %19 = arith.addf %15, %18 : vector<1x256xf32>
    %20 = math.rsqrt %19 : vector<1x256xf32>
    %21 = vector.broadcast %20 : vector<1x256xf32> to vector<16x256xf32>
    %22 = arith.mulf %17, %21 : vector<16x256xf32>
    %cst_9 = arith.constant dense<0xFF800000> : vector<16xf32>
    %23 = vector.multi_reduction <maximumf>, %22, %cst_9 [1] : vector<16x256xf32> to vector<16xf32>
    %24 = vector.shape_cast %23 : vector<16xf32> to vector<16x1xf32>
    %25 = vector.broadcast %24 : vector<16x1xf32> to vector<16x256xf32>
    %26 = arith.subf %22, %25 : vector<16x256xf32>
    %27 = math.exp %26 : vector<16x256xf32>
    %cst_10 = arith.constant dense<0.000000e+00> : vector<16xf32>
    %28 = vector.multi_reduction <add>, %27, %cst_10 [1] : vector<16x256xf32> to vector<16xf32>
    %29 = vector.shape_cast %28 : vector<16xf32> to vector<16x1xf32>
    %30 = vector.broadcast %29 : vector<16x1xf32> to vector<16x256xf32>
    %31 = arith.divf %27, %30 : vector<16x256xf32>
    %c0_11 = arith.constant 0 : index
    %c0_12 = arith.constant 0 : index
    %32 = vector.load %arg3[%c0_11, %c0_12] : memref<16x256xf32, #tpu.memory_space<vmem>>, vector<16x256xf32>
    tpu.vector_store %arg3[%c0_11, %c0_12], %31 {strides = array<i32>} : memref<16x256xf32, #tpu.memory_space<vmem>>, vector<16x256xf32>,
    return
  }
  func.func @transform_0(%arg0: i32) -> (i32, i32) {
    %c0_i32 = arith.constant 0 : i32
    %c0_i32_0 = arith.constant 0 : i32
    %c0_i32_1 = arith.constant 0 : i32
    return %c0_i32, %c0_i32_0 : i32, i32
  }
  func.func @transform_1(%arg0: i32) -> (i32, i32) {
    %c0_i32 = arith.constant 0 : i32
    %c0_i32_0 = arith.constant 0 : i32
    %c0_i32_1 = arith.constant 0 : i32
    return %c0_i32, %c0_i32_0 : i32, i32
  }
  func.func @transform_2(%arg0: i32) -> (i32, i32) {
    %c0_i32 = arith.constant 0 : i32
    %c0_i32_0 = arith.constant 0 : i32
    %c0_i32_1 = arith.constant 0 : i32
    return %c0_i32, %c0_i32_0 : i32, i32
  }
}

module attributes {stable_mosaic.version = 11 : i64} {
  func.func @loss_kernel(%arg0: i32, %arg1: memref<8x16xf32, #tpu.memory_space<vmem>>, %arg2: memref<8x256xf32, #tpu.memory_space<vmem>>, %arg3: memref<32x256xf32, #tpu.memory_space<vmem>>, %arg4: memref<32x1xf32, #tpu.memory_space<vmem>>, %arg5: memref<16x256xbf16, #tpu.memory_space<vmem>>, %arg6: memref<256x16xbf16, #tpu.memory_space<vmem>>, %arg7: memref<16x256xbf16, #tpu.memory_space<vmem>>, %arg8: memref<1x1xf32, #tpu.memory_space<vmem>>) attributes {dimension_semantics = [#tpu.dimension_semantics<arbitrary>], iteration_bounds = array<i64: 2>, scalar_prefetch = 0 : i64, scratch_operands = 0 : i64, tpu.core_type = #tpu.core_type<tc>, window_params = [{transform_indices = @transform_0, window_bounds = array<i64: 8, 16>}, {transform_indices = @transform_1, window_bounds = array<i64: 8, 256>}, {transform_indices = @transform_2, window_bounds = array<i64: 32, 256>}, {transform_indices = @transform_3, window_bounds = array<i64: 32, 1>}, {pipeline_mode = #tpu.pipeline_mode<synchronous>, transform_indices = @transform_4, window_bounds = array<i64: 16, 256>}, {pipeline_mode = #tpu.pipeline_mode<synchronous>, transform_indices = @transform_5, window_bounds = array<i64: 256, 16>}, {pipeline_mode = #tpu.pipeline_mode<synchronous>, transform_indices = @transform_6, window_bounds = array<i64: 16, 256>}, {pipeline_mode = #tpu.pipeline_mode<synchronous>, transform_indices = @transform_7, window_bounds = array<i64: 1, 1>}]} {
    %c0_i32 = arith.constant 0 : i32
    %0 = arith.cmpi eq, %arg0, %c0_i32 : i32
    %1 = arith.extui %0 : i1 to i32
    %c0_i32_0 = arith.constant 0 : i32
    %2 = arith.cmpi ne, %1, %c0_i32_0 : i32
    scf.if %2 {
      %cst_53 = arith.constant 0.000000e+00 : f32
      %128 = vector.broadcast %cst_53 : f32 to vector<1x1xf32>
      %c0_54 = arith.constant 0 : index
      %c0_55 = arith.constant 0 : index
      %129 = vector.load %arg8[%c0_54, %c0_55] : memref<1x1xf32, #tpu.memory_space<vmem>>, vector<1x1xf32>
      tpu.vector_store %arg8[%c0_54, %c0_55], %128 {strides = array<i32>} : memref<1x1xf32, #tpu.memory_space<vmem>>, vector<1x1xf32>,
    } else {
    }
    %c0 = arith.constant 0 : index
    %c0_1 = arith.constant 0 : index
    %3 = vector.load %arg1[%c0, %c0_1] : memref<8x16xf32, #tpu.memory_space<vmem>>, vector<8x16xf32>
    %c0_2 = arith.constant 0 : index
    %c0_3 = arith.constant 0 : index
    %4 = vector.load %arg2[%c0_2, %c0_3] : memref<8x256xf32, #tpu.memory_space<vmem>>, vector<8x256xf32>
    %c0_4 = arith.constant 0 : index
    %c0_5 = arith.constant 0 : index
    %5 = vector.load %arg3[%c0_4, %c0_5] : memref<32x256xf32, #tpu.memory_space<vmem>>, vector<32x256xf32>
    %c0_6 = arith.constant 0 : index
    %c0_7 = arith.constant 0 : index
    %6 = vector.load %arg4[%c0_6, %c0_7] : memref<32x1xf32, #tpu.memory_space<vmem>>, vector<32x1xf32>
    %c0_8 = arith.constant 0 : index
    %c0_9 = arith.constant 0 : index
    %7 = vector.load %arg5[%c0_8, %c0_9] : memref<16x256xbf16, #tpu.memory_space<vmem>>, vector<16x256xbf16>
    %c0_10 = arith.constant 0 : index
    %c0_11 = arith.constant 0 : index
    %8 = vector.load %arg6[%c0_10, %c0_11] : memref<256x16xbf16, #tpu.memory_space<vmem>>, vector<256x16xbf16>
    %c0_12 = arith.constant 0 : index
    %c0_13 = arith.constant 0 : index
    %9 = vector.load %arg7[%c0_12, %c0_13] : memref<16x256xbf16, #tpu.memory_space<vmem>>, vector<16x256xbf16>
    %10 = tpu.iota {dimensions = array<i32: 0>} : vector<32x8xi32>
    %11 = tpu.iota {dimensions = array<i32: 1>} : vector<32x8xi32>
    %c4_i32 = arith.constant 4 : i32
    %12 = vector.broadcast %c4_i32 : i32 to vector<32x8xi32>
    %13 = arith.muli %11, %12 : vector<32x8xi32>
    %14 = arith.cmpi sge, %10, %13 : vector<32x8xi32>
    %c4_i32_14 = arith.constant 4 : i32
    %15 = vector.broadcast %c4_i32_14 : i32 to vector<32x8xi32>
    %16 = arith.addi %13, %15 : vector<32x8xi32>
    %17 = arith.cmpi slt, %10, %16 : vector<32x8xi32>
    %18 = arith.andi %14, %17 : vector<32x8xi1>
    %19 = arith.extui %18 : vector<32x8xi1> to vector<32x8xi32>
    %20 = arith.sitofp %19 : vector<32x8xi32> to vector<32x8xf32>
    %cst = arith.constant 9.99999996E-13 : f32
    %21 = vector.broadcast %cst : f32 to vector<8x256xf32>
    %22 = arith.addf %4, %21 : vector<8x256xf32>
    %23 = math.log %22 : vector<8x256xf32>
    %24 = vector.broadcast %6 : vector<32x1xf32> to vector<32x8xf32>
    %25 = arith.mulf %20, %24 : vector<32x8xf32>
    %cst_15 = arith.constant dense<0.000000e+00> : vector<8x256xf32>
    %26 = tpu.matmul %25, %5, %cst_15 {dimension_numbers = #tpu.dot_dimension_numbers<[0], [0], [1], [1], [0, 1, 1, 1], [], []>} : vector<32x8xf32>, vector<32x256xf32>, vector<8x256xf32> -> vector<8x256xf32>
    %27 = arith.mulf %26, %23 : vector<8x256xf32>
    %cst_16 = arith.constant dense<0.000000e+00> : vector<8xf32>
    %28 = vector.multi_reduction <add>, %27, %cst_16 [1] : vector<8x256xf32> to vector<8xf32>
    %29 = vector.shape_cast %28 : vector<8xf32> to vector<8x1xf32>
    %cst_17 = arith.constant 0.000000e+00 : f32
    %30 = vector.broadcast %cst_17 : f32 to vector<8x1xf32>
    %31 = arith.subf %30, %29 : vector<8x1xf32>
    %cst_18 = arith.constant dense<0.000000e+00> : vector<1xf32>
    %32 = vector.multi_reduction <add>, %31, %cst_18 [0] : vector<8x1xf32> to vector<1xf32>
    %33 = vector.shape_cast %32 : vector<1xf32> to vector<1x1xf32>
    %cst_19 = arith.constant dense<0xFF800000> : vector<32xf32>
    %34 = vector.multi_reduction <maximumf>, %5, %cst_19 [1] : vector<32x256xf32> to vector<32xf32>
    %35 = vector.shape_cast %34 : vector<32xf32> to vector<32x1xf32>
    %36 = vector.broadcast %35 : vector<32x1xf32> to vector<32x256xf32>
    %37 = arith.subf %5, %36 : vector<32x256xf32>
    %38 = math.exp %37 : vector<32x256xf32>
    %cst_20 = arith.constant dense<0.000000e+00> : vector<32xf32>
    %39 = vector.multi_reduction <add>, %38, %cst_20 [1] : vector<32x256xf32> to vector<32xf32>
    %40 = vector.shape_cast %39 : vector<32xf32> to vector<32x1xf32>
    %41 = tpu.reciprocal %40 {approx = true} : vector<32x1xf32> -> vector<32x1xf32>
    %42 = vector.broadcast %41 : vector<32x1xf32> to vector<32x256xf32>
    %43 = arith.mulf %38, %42 : vector<32x256xf32>
    %44 = math.exp %43 : vector<32x256xf32>
    %cst_21 = arith.constant dense<0.000000e+00> : vector<32xf32>
    %45 = vector.multi_reduction <add>, %44, %cst_21 [1] : vector<32x256xf32> to vector<32xf32>
    %46 = vector.shape_cast %45 : vector<32xf32> to vector<32x1xf32>
    %47 = tpu.reciprocal %46 {approx = true} : vector<32x1xf32> -> vector<32x1xf32>
    %48 = vector.broadcast %47 : vector<32x1xf32> to vector<32x256xf32>
    %49 = arith.mulf %44, %48 : vector<32x256xf32>
    %cst_22 = arith.constant dense<0.000000e+00> : vector<32x16xf32>
    %50 = tpu.matmul %20, %3, %cst_22 {dimension_numbers = #tpu.dot_dimension_numbers<[1], [0], [0], [1], [0, 0, 1, 1], [], []>} : vector<32x8xf32>, vector<8x16xf32>, vector<32x16xf32> -> vector<32x16xf32>
    %cst_23 = arith.constant 6.250000e-02 : f32
    %51 = vector.broadcast %cst_23 : f32 to vector<32x16xf32>
    %52 = arith.truncf %51 : vector<32x16xf32> to vector<32x16xbf16>
    %cst_24 = arith.constant dense<0.000000e+00> : vector<32x256xf32>
    %53 = tpu.matmul %52, %7, %cst_24 {dimension_numbers = #tpu.dot_dimension_numbers<[1], [0], [0], [1], [0, 0, 1, 1], [], []>} : vector<32x16xbf16>, vector<16x256xbf16>, vector<32x256xf32> -> vector<32x256xf32>
    %cst_25 = arith.constant 9.99999996E-13 : f32
    %54 = vector.broadcast %cst_25 : f32 to vector<32x256xf32>
    %55 = arith.addf %53, %54 : vector<32x256xf32>
    %56 = tpu.reciprocal %55 {approx = true} : vector<32x256xf32> -> vector<32x256xf32>
    %57 = arith.mulf %49, %56 : vector<32x256xf32>
    %58 = arith.truncf %57 : vector<32x256xf32> to vector<32x256xbf16>
    %cst_26 = arith.constant dense<0.000000e+00> : vector<32x16xf32>
    %59 = tpu.matmul %58, %8, %cst_26 {dimension_numbers = #tpu.dot_dimension_numbers<[1], [0], [0], [1], [0, 0, 1, 1], [], []>} : vector<32x256xbf16>, vector<256x16xbf16>, vector<32x16xf32> -> vector<32x16xf32>
    %cst_27 = arith.constant 9.99999996E-13 : f32
    %60 = vector.broadcast %cst_27 : f32 to vector<32x16xf32>
    %61 = arith.addf %59, %60 : vector<32x16xf32>
    %62 = tpu.reciprocal %61 {approx = true} : vector<32x16xf32> -> vector<32x16xf32>
    %63 = arith.mulf %50, %62 : vector<32x16xf32>
    %64 = arith.truncf %63 : vector<32x16xf32> to vector<32x16xbf16>
    %cst_28 = arith.constant dense<0.000000e+00> : vector<32x256xf32>
    %65 = tpu.matmul %64, %7, %cst_28 {dimension_numbers = #tpu.dot_dimension_numbers<[1], [0], [0], [1], [0, 0, 1, 1], [], []>} : vector<32x16xbf16>, vector<16x256xbf16>, vector<32x256xf32> -> vector<32x256xf32>
    %cst_29 = arith.constant 9.99999996E-13 : f32
    %66 = vector.broadcast %cst_29 : f32 to vector<32x256xf32>
    %67 = arith.addf %65, %66 : vector<32x256xf32>
    %68 = tpu.reciprocal %67 {approx = true} : vector<32x256xf32> -> vector<32x256xf32>
    %69 = arith.mulf %49, %68 : vector<32x256xf32>
    %70 = arith.truncf %69 : vector<32x256xf32> to vector<32x256xbf16>
    %cst_30 = arith.constant dense<0.000000e+00> : vector<32x16xf32>
    %71 = tpu.matmul %70, %8, %cst_30 {dimension_numbers = #tpu.dot_dimension_numbers<[1], [0], [0], [1], [0, 0, 1, 1], [], []>} : vector<32x256xbf16>, vector<256x16xbf16>, vector<32x16xf32> -> vector<32x16xf32>
    %cst_31 = arith.constant 9.99999996E-13 : f32
    %72 = vector.broadcast %cst_31 : f32 to vector<32x16xf32>
    %73 = arith.addf %71, %72 : vector<32x16xf32>
    %74 = tpu.reciprocal %73 {approx = true} : vector<32x16xf32> -> vector<32x16xf32>
    %75 = arith.mulf %50, %74 : vector<32x16xf32>
    %76 = arith.truncf %75 : vector<32x16xf32> to vector<32x16xbf16>
    %cst_32 = arith.constant dense<0.000000e+00> : vector<32x256xf32>
    %77 = tpu.matmul %76, %7, %cst_32 {dimension_numbers = #tpu.dot_dimension_numbers<[1], [0], [0], [1], [0, 0, 1, 1], [], []>} : vector<32x16xbf16>, vector<16x256xbf16>, vector<32x256xf32> -> vector<32x256xf32>
    %cst_33 = arith.constant 9.99999996E-13 : f32
    %78 = vector.broadcast %cst_33 : f32 to vector<32x256xf32>
    %79 = arith.addf %77, %78 : vector<32x256xf32>
    %80 = tpu.reciprocal %79 {approx = true} : vector<32x256xf32> -> vector<32x256xf32>
    %81 = arith.mulf %49, %80 : vector<32x256xf32>
    %82 = arith.truncf %81 : vector<32x256xf32> to vector<32x256xbf16>
    %cst_34 = arith.constant dense<0.000000e+00> : vector<32x16xf32>
    %83 = tpu.matmul %82, %8, %cst_34 {dimension_numbers = #tpu.dot_dimension_numbers<[1], [0], [0], [1], [0, 0, 1, 1], [], []>} : vector<32x256xbf16>, vector<256x16xbf16>, vector<32x16xf32> -> vector<32x16xf32>
    %cst_35 = arith.constant 9.99999996E-13 : f32
    %84 = vector.broadcast %cst_35 : f32 to vector<32x16xf32>
    %85 = arith.addf %83, %84 : vector<32x16xf32>
    %86 = tpu.reciprocal %85 {approx = true} : vector<32x16xf32> -> vector<32x16xf32>
    %87 = arith.mulf %50, %86 : vector<32x16xf32>
    %88 = arith.truncf %87 : vector<32x16xf32> to vector<32x16xbf16>
    %cst_36 = arith.constant dense<0.000000e+00> : vector<32x256xf32>
    %89 = tpu.matmul %88, %7, %cst_36 {dimension_numbers = #tpu.dot_dimension_numbers<[1], [0], [0], [1], [0, 0, 1, 1], [], []>} : vector<32x16xbf16>, vector<16x256xbf16>, vector<32x256xf32> -> vector<32x256xf32>
    %cst_37 = arith.constant 9.99999996E-13 : f32
    %90 = vector.broadcast %cst_37 : f32 to vector<32x256xf32>
    %91 = arith.addf %89, %90 : vector<32x256xf32>
    %92 = tpu.reciprocal %91 {approx = true} : vector<32x256xf32> -> vector<32x256xf32>
    %93 = arith.mulf %49, %92 : vector<32x256xf32>
    %94 = arith.truncf %93 : vector<32x256xf32> to vector<32x256xbf16>
    %cst_38 = arith.constant dense<0.000000e+00> : vector<32x16xf32>
    %95 = tpu.matmul %94, %8, %cst_38 {dimension_numbers = #tpu.dot_dimension_numbers<[1], [0], [0], [1], [0, 0, 1, 1], [], []>} : vector<32x256xbf16>, vector<256x16xbf16>, vector<32x16xf32> -> vector<32x16xf32>
    %cst_39 = arith.constant 9.99999996E-13 : f32
    %96 = vector.broadcast %cst_39 : f32 to vector<32x16xf32>
    %97 = arith.addf %95, %96 : vector<32x16xf32>
    %98 = tpu.reciprocal %97 {approx = true} : vector<32x16xf32> -> vector<32x16xf32>
    %99 = arith.mulf %50, %98 : vector<32x16xf32>
    %100 = arith.truncf %99 : vector<32x16xf32> to vector<32x16xbf16>
    %cst_40 = arith.constant dense<0.000000e+00> : vector<32x256xf32>
    %101 = tpu.matmul %100, %7, %cst_40 {dimension_numbers = #tpu.dot_dimension_numbers<[1], [0], [0], [1], [0, 0, 1, 1], [], []>} : vector<32x16xbf16>, vector<16x256xbf16>, vector<32x256xf32> -> vector<32x256xf32>
    %cst_41 = arith.constant 9.99999996E-13 : f32
    %102 = vector.broadcast %cst_41 : f32 to vector<32x256xf32>
    %103 = arith.addf %101, %102 : vector<32x256xf32>
    %104 = tpu.reciprocal %103 {approx = true} : vector<32x256xf32> -> vector<32x256xf32>
    %105 = arith.mulf %49, %104 : vector<32x256xf32>
    %106 = arith.truncf %105 : vector<32x256xf32> to vector<32x256xbf16>
    %cst_42 = arith.constant dense<0.000000e+00> : vector<32x16xf32>
    %107 = tpu.matmul %106, %8, %cst_42 {dimension_numbers = #tpu.dot_dimension_numbers<[1], [0], [0], [1], [0, 0, 1, 1], [], []>} : vector<32x256xbf16>, vector<256x16xbf16>, vector<32x16xf32> -> vector<32x16xf32>
    %cst_43 = arith.constant 9.99999996E-13 : f32
    %108 = vector.broadcast %cst_43 : f32 to vector<32x16xf32>
    %109 = arith.addf %107, %108 : vector<32x16xf32>
    %110 = tpu.reciprocal %109 {approx = true} : vector<32x16xf32> -> vector<32x16xf32>
    %111 = arith.mulf %50, %110 : vector<32x16xf32>
    %112 = arith.truncf %111 : vector<32x16xf32> to vector<32x16xbf16>
    %cst_44 = arith.constant dense<0.000000e+00> : vector<32x256xf32>
    %113 = tpu.matmul %112, %9, %cst_44 {dimension_numbers = #tpu.dot_dimension_numbers<[1], [0], [0], [1], [0, 0, 1, 1], [], []>} : vector<32x16xbf16>, vector<16x256xbf16>, vector<32x256xf32> -> vector<32x256xf32>
    %114 = arith.mulf %113, %105 : vector<32x256xf32>
    %cst_45 = arith.constant dense<0.000000e+00> : vector<32xf32>
    %115 = vector.multi_reduction <add>, %114, %cst_45 [1] : vector<32x256xf32> to vector<32xf32>
    %116 = vector.shape_cast %115 : vector<32xf32> to vector<32x1xf32>
    %117 = arith.mulf %6, %116 : vector<32x1xf32>
    %cst_46 = arith.constant dense<0.000000e+00> : vector<1xf32>
    %118 = vector.multi_reduction <add>, %117, %cst_46 [0] : vector<32x1xf32> to vector<1xf32>
    %119 = vector.shape_cast %118 : vector<1xf32> to vector<1x1xf32>
    %c0_47 = arith.constant 0 : index
    %c0_48 = arith.constant 0 : index
    %120 = vector.load %arg8[%c0_47, %c0_48] : memref<1x1xf32, #tpu.memory_space<vmem>>, vector<1x1xf32>
    %cst_49 = arith.constant 1.000000e-01 : f32
    %121 = vector.broadcast %cst_49 : f32 to vector<1x1xf32>
    %122 = arith.mulf %121, %119 : vector<1x1xf32>
    %123 = arith.addf %33, %122 : vector<1x1xf32>
    %cst_50 = arith.constant 6.250000e-02 : f32
    %124 = vector.broadcast %cst_50 : f32 to vector<1x1xf32>
    %125 = arith.mulf %123, %124 : vector<1x1xf32>
    %126 = arith.addf %120, %125 : vector<1x1xf32>
    %c0_51 = arith.constant 0 : index
    %c0_52 = arith.constant 0 : index
    %127 = vector.load %arg8[%c0_51, %c0_52] : memref<1x1xf32, #tpu.memory_space<vmem>>, vector<1x1xf32>
    tpu.vector_store %arg8[%c0_51, %c0_52], %126 {strides = array<i32>} : memref<1x1xf32, #tpu.memory_space<vmem>>, vector<1x1xf32>,
    return
  }
  func.func @transform_0(%arg0: i32) -> (i32, i32) {
    %c0_i32 = arith.constant 0 : i32
    %c0_i32_0 = arith.constant 0 : i32
    return %arg0, %c0_i32 : i32, i32
  }
  func.func @transform_1(%arg0: i32) -> (i32, i32) {
    %c0_i32 = arith.constant 0 : i32
    %c0_i32_0 = arith.constant 0 : i32
    return %arg0, %c0_i32 : i32, i32
  }
  func.func @transform_2(%arg0: i32) -> (i32, i32) {
    %c0_i32 = arith.constant 0 : i32
    %c0_i32_0 = arith.constant 0 : i32
    return %arg0, %c0_i32 : i32, i32
  }
  func.func @transform_3(%arg0: i32) -> (i32, i32) {
    %c0_i32 = arith.constant 0 : i32
    %c0_i32_0 = arith.constant 0 : i32
    return %arg0, %c0_i32 : i32, i32
  }
  func.func @transform_4(%arg0: i32) -> (i32, i32) {
    %c0_i32 = arith.constant 0 : i32
    %c0_i32_0 = arith.constant 0 : i32
    %c0_i32_1 = arith.constant 0 : i32
    return %c0_i32, %c0_i32_0 : i32, i32
  }
  func.func @transform_5(%arg0: i32) -> (i32, i32) {
    %c0_i32 = arith.constant 0 : i32
    %c0_i32_0 = arith.constant 0 : i32
    %c0_i32_1 = arith.constant 0 : i32
    return %c0_i32, %c0_i32_0 : i32, i32
  }
  func.func @transform_6(%arg0: i32) -> (i32, i32) {
    %c0_i32 = arith.constant 0 : i32
    %c0_i32_0 = arith.constant 0 : i32
    %c0_i32_1 = arith.constant 0 : i32
    return %c0_i32, %c0_i32_0 : i32, i32
  }
  func.func @transform_7(%arg0: i32) -> (i32, i32) {
    %c0_i32 = arith.constant 0 : i32
    %c0_i32_0 = arith.constant 0 : i32
    %c0_i32_1 = arith.constant 0 : i32
    return %c0_i32, %c0_i32_0 : i32, i32
  }
}

</mosaic_0001>

<bundles_post_ra>
// kernel: decoder_forward.2
= control target key start
LH: loop header
LB: loop body
LE: loop exit
PB: predicated region body
PF: predicated region fallthrough
CT: control target
= control target key end

     0   :  { %7 = vsyncpa [#allocation3], 0  ;;  %s255_s9 = smov [#allocation2]   ;;  %s295_s0 = inlined_call_operand.vmem [shape: f32[16,16], index: 0, kind: input, shape index: {}]   ;;  %s296_s1 = inlined_call_operand.hbm [shape: f32[16,256], index: 1, kind: input, shape index: {}]   ;;  %s297_s2 = inlined_call_operand.vmem [shape: f32[16,256], index: 2, kind: output, shape index: {}]  }
   0x1   :  { %s15_s10 = sshll.u32 %s255_s9, 4  ;;  %s16_s10 = int_to_ptr.vmem [resolvable:$true] %s15_s10 }
   0x2   :  { %s241_s11 = scalar_lea.vmem %s16_s10, 512  ;;  %p246_p1 = scmp.lt.s32.totalorder %s16_s10, %s16_s10 }
   0x3   :  { %p242_p0 = scmp.ne.s32.totalorder %s16_s10, %s241_s11  ;;  %p247_p2 = scmp.lt.s32.totalorder %s241_s11, %s241_s11 }
   0x5   :  { %p248_p3 = por %p247_p2, %p246_p1 }
   0x7   :  { %p249_p4 = pnand %p248_p3, %p242_p0 }
   0x9   :  { %252 = shalt.err (!%p249_p4)
}
   0xa   :  { %s256_s12 = smov 256   ;;  %s257_s13 = smov 16  }
   0xb   :  { %21 = dma.hbm_to_vmem [thread:$0]  %s296_s1, 512, %s16_s10, [#allocation3], %s256_s12, %s256_s12, %s257_s13  }
   0xc   :  { %253 = dma.done.wait [#allocation3], 512  }
   0xd   :  { %254 = vsyncadd [#allocation3], 4294966784  ;;  %v258_v0 = vmov 0.0   ;;  %v28_v1 = vld [vmem:[#allocation2 + $0x18] sm:$0xff]  ;;  %v27_v2 = vld [vmem:[#allocation2 + $0x10] sm:$0xff]  ;;  %vm35_vm0 = vcmask 130048  }
   0xe   :  { %106 = vmatprep.mubr.f32.mxu0 %v258_v0  ;;  %112 = vmatprep.mubr.f32.mxu1 %v258_v0  ;;  %v26_v3 = vld [vmem:[#allocation2 + $0x8] sm:$0xff]  ;;  %v32_v4 = vsub.f32 2.0, %v28_v1  ;;  %v31_v5 = vsub.f32 2.0, %v27_v2  ;;  %v25_v7 = vld [vmem:[#allocation2] sm:$0xff] }
   0xf   :  { %v30_v6 = vsub.f32 2.0, %v26_v3  ;;  %v29_v8 = vsub.f32 2.0, %v25_v7  ;;  %v33_v9 = vld [vmem:[%s295_s0] sm:$0xff]  ;;  %v34_v10 = vld [vmem:[%s295_s0 + $0x8] sm:$0xff] }
  0x10   :  { %70 = vmatprep.subr.mxu0 %v32_v4  ;;  %209 = vmatprep.subr.mxu1 %v32_v4 }
  0x11   :  { %71 = vmatpush1.msra.mxu0 %v31_v5  ;;  %211 = vmatpush1.msra.mxu1 %v31_v5 }
  0x12   :  { %72 = vmatprep.subr.mxu0 %v30_v6  ;;  %210 = vmatprep.subr.mxu1 %v30_v6 }
  0x13   :  { %73 = vmatpush1.msra.mxu0 %v29_v8  ;;  %212 = vmatpush1.msra.mxu1 %v29_v8 }
  0x14   :  { %207 = vmatmul.mubr.msk.f32.vlgmr.msra.gmra.mxu0 %vm35_vm0, %v33_v9  ;;  %208 = vmatmul.mubr.msk.f32.vlgmr.msra.gmra.mxu1 %vm35_vm0, %v34_v10 }
  0xd4   :  { %v108_v11 = vpop.f32.mrf.mxu0  ;;  %v114_v12 = vpop.f32.mrf.mxu1 }
  0xd5   :  { %v119_v13 = vadd.f32 %v114_v12, %v108_v11 }
  0xd6   :  { %v110_v14 = vpop.f32.mrf.mxu0  ;;  %v116_v15 = vpop.f32.mrf.mxu1 }
  0xd7   :  { %v120_v16 = vrot.slane %v119_v13, 4  ;;  %v126_v17 = vadd.f32 %v116_v15, %v110_v14 }
  0xd9   :  { %v121_v18 = vadd.f32 %v120_v16, %v119_v13  ;;  %v127_v19 = vrot.slane %v126_v17, 4 }
  0xdb   :  { %v122_v20 = vrot.slane %v121_v18, 2  ;;  %v128_v21 = vadd.f32 %v127_v19, %v126_v17 }
  0xdd   :  { %v123_v22 = vadd.f32 %v122_v20, %v121_v18  ;;  %v129_v23 = vrot.slane %v128_v21, 2 }
  0xdf   :  { %v124_v24 = vrot.slane %v123_v22, 1  ;;  %v130_v25 = vadd.f32 %v129_v23, %v128_v21 }
  0xe1   :  { %v125_v26 = vadd.f32 %v124_v24, %v123_v22  ;;  %v131_v27 = vrot.slane %v130_v25, 1 }
  0xe3   :  { %v134_v28 = vmul.f32 0.0625, %v125_v26  ;;  %v132_v29 = vadd.f32 %v131_v27, %v130_v25 }
  0xe5   :  { %v138_v30 = vsub.f32 %v114_v12, %v134_v28  ;;  %v135_v31 = vmul.f32 0.0625, %v132_v29  ;;  %v136_v32 = vsub.f32 %v108_v11, %v134_v28 }
  0xe7   :  { %v142_v33 = vmul.f32 %v138_v30, %v138_v30  ;;  %v137_v34 = vsub.f32 %v110_v14, %v135_v31  ;;  %v139_v35 = vsub.f32 %v116_v15, %v135_v31  ;;  %v140_v36 = vmul.f32 %v136_v32, %v136_v32 }
  0xe9   :  { %v141_v37 = vmul.f32 %v137_v34, %v137_v34  ;;  %v143_v38 = vmul.f32 %v139_v35, %v139_v35  ;;  %v144_v39 = vadd.f32 %v142_v33, %v140_v36 }
  0xeb   :  { %v151_v40 = vadd.f32 %v143_v38, %v141_v37  ;;  %v145_v41 = vrot.slane %v144_v39, 4 }
  0xed   :  { %v152_v42 = vrot.slane %v151_v40, 4  ;;  %v146_v43 = vadd.f32 %v145_v41, %v144_v39 }
  0xef   :  { %v153_v44 = vadd.f32 %v152_v42, %v151_v40  ;;  %v147_v45 = vrot.slane %v146_v43, 2 }
  0xf1   :  { %v154_v46 = vrot.slane %v153_v44, 2  ;;  %v148_v47 = vadd.f32 %v147_v45, %v146_v43 }
  0xf3   :  { %v155_v48 = vadd.f32 %v154_v46, %v153_v44  ;;  %v149_v49 = vrot.slane %v148_v47, 1 }
  0xf5   :  { %v156_v50 = vrot.slane %v155_v48, 1  ;;  %v150_v51 = vadd.f32 %v149_v49, %v148_v47 }
  0xf7   :  { %v157_v52 = vadd.f32 %v156_v50, %v155_v48  ;;  %v158_v53 = vmul.f32 0.0625, %v150_v51 }
  0xf9   :  { %v159_v54 = vmul.f32 0.0625, %v157_v52  ;;  %v160_v55 = vadd.f32 1e-05, %v158_v53 }
  0xfb   :  { %v161_v56 = vadd.f32 1e-05, %v159_v54  ;;  %217 = vrsqrt.f32 %v160_v55 }
  0xfd   :  { %219 = vrsqrt.f32 %v161_v56 }
 0x108   :  { %v218_v57 = vpop.eup %217 }
 0x109   :  { %v164_v59 = vmul.f32 %v218_v57, %v136_v32  ;;  %v166_v63 = vmul.f32 %v218_v57, %v138_v30 }
 0x10a   :  { %v220_v58 = vpop.eup %219 }
 0x10b   :  { %v165_v60 = vmul.f32 %v220_v58, %v137_v34  ;;  %v167_v61 = vmul.f32 %v220_v58, %v139_v35 }
 0x10d   :  { %v168_v62 = vmax.f32 %v164_v59, %v165_v60  ;;  %v171_v0 = vmax.f32 %v166_v63, %v167_v61 }
 0x10f   :  { %169 = vmax.xlane.f32.xlu0 %v168_v62 }
 0x113   :  { %172 = vmax.xlane.f32.xlu0 %v171_v0 }
 0x198   :  { %v170_v1 = vpop.xlane.xlu0 %169 }
 0x199   :  { %v174_v2 = vsub.f32 %v164_v59, %v170_v1  ;;  %v175_v3 = vsub.f32 %v165_v60, %v170_v1 }
 0x19b   :  { %v178_v4 = vmul.f32 1.442695, %v174_v2  ;;  %v180_v5 = vmul.f32 1.442695, %v175_v3 }
 0x19c   :  { %v173_v6 = vpop.xlane.xlu0 %172 }
 0x19d   :  { %221 = vpow2.f32 %v178_v4  ;;  %v176_v7 = vsub.f32 %v166_v63, %v173_v6  ;;  %v177_v8 = vsub.f32 %v167_v61, %v173_v6 }
 0x19e   :  { %223 = vpow2.f32 %v180_v5 }
 0x19f   :  { %v182_v9 = vmul.f32 1.442695, %v176_v7  ;;  %v184_v10 = vmul.f32 1.442695, %v177_v8 }
 0x1a1   :  { %225 = vpow2.f32 %v182_v9 }
 0x1a2   :  { %227 = vpow2.f32 %v184_v10 }
 0x1aa   :  { %v222_v11 = vpop.eup %221 }
 0x1ab   :  { %v224_v12 = vpop.eup %223 }
 0x1ac   :  { %v186_v13 = vadd.f32 %v224_v12, %v222_v11 }
 0x1ae   :  { %v226_v14 = vpop.eup %225  ;;  %187 = vadd.xlane.f32.xlu1 %v186_v13 }
 0x1af   :  { %v228_v15 = vpop.eup %227 }
 0x1b0   :  { %v189_v16 = vadd.f32 %v228_v15, %v226_v14 }
 0x1b2   :  { %190 = vadd.xlane.f32.xlu1 %v189_v16 }
 0x237   :  { %v188_v17 = vpop.xlane.xlu1 %187 }
 0x238   :  { %229 = vrcp.f32 %v188_v17 }
 0x23b   :  { %v191_v18 = vpop.xlane.xlu1 %190 }
 0x23c   :  { %231 = vrcp.f32 %v191_v18 }
 0x245   :  { %v230_v19 = vpop.eup %229 }
 0x246   :  { %v193_v20 = vmul.f32 %v230_v19, %v222_v11  ;;  %v194_v21 = vmul.f32 %v230_v19, %v224_v12 }
 0x248   :  { %198 = vst [vmem:[%s297_s2] sm:$0xff] %v193_v20  ;;  %199 = vst [vmem:[%s297_s2 + $0x8] sm:$0xff] %v194_v21 }
 0x249   :  { %v232_v22 = vpop.eup %231 }
 0x24a   :  { %v196_v23 = vmul.f32 %v232_v22, %v226_v14  ;;  %v197_v24 = vmul.f32 %v232_v22, %v228_v15 }
 0x24c   :  { %200 = vst [vmem:[%s297_s2 + $0x10] sm:$0xff] %v196_v23  ;;  %201 = vst [vmem:[%s297_s2 + $0x18] sm:$0xff] %v197_v24 }
 0x24d   :  { %206 = vsyncpa [#allocation3], 1 }

// kernel: decoder_forward.3
= control target key start
LH: loop header
LB: loop body
LE: loop exit
PB: predicated region body
PF: predicated region fallthrough
CT: control target
= control target key end

     0   :  { %12 = vsyncpa [#allocation3], 0  ;;  %s2267_s24 = smov 0   ;;  %s2736_s0 = inlined_call_operand.vmem [shape: f32[16,16], index: 0, kind: input, shape index: {}]   ;;  %s2737_s1 = inlined_call_operand.vmem [shape: f32[16,256], index: 1, kind: input, shape index: {}]   ;;  %s2738_s2 = inlined_call_operand.vmem [shape: f32[64,256], index: 2, kind: input, shape index: {}]   ;;  %s2739_s3 = inlined_call_operand.vmem [shape: f32[64,1], index: 3, kind: input, shape index: {}]   ;;  %s2740_s4 = inlined_call_operand.vmem [shape: bf16[16,256], index: 4, kind: input, shape index: {}]   ;;  %s2741_s5 = inlined_call_operand.vmem [shape: bf16[256,16], index: 5, kind: input, shape index: {}]   ;;  %s2742_s6 = inlined_call_operand.vmem [shape: bf16[16,256], index: 6, kind: input, shape index: {}]   ;;  %s2743_s7 = inlined_call_operand.hbm [shape: f32[1,1], index: 7, kind: output, shape index: {}]  }
   0x1 LB: > { %s2273_s25 = sadd.s32 4294967295, %s2220_s24   ;;  %p1757_p0 = scmp.ge.s32.totalorder %s2220_s24, 1  ;;  %s2220_s24 = sphi %s2267_s24, %s18_s24  }
   0x2   : > { %p265_p1 = scmp.lt.s32.totalorder %s2220_s24, 3 }
   0x4   : > { %p266_p2 = pnand %p1757_p0, %p265_p1 }
   0x5   : > { %p307_p3 = scmp.lt.s32.totalorder (!%p266_p2), %s2273_s25, 1  ;;  %s1761_s26 = sshll.u32 (!%p266_p2), %s2273_s25, 2 }
   0x6   : > { %269 = sbr.rel (%p266_p2) target bundleno = 2916 (0xb64), region = 48  ;;  %p317_p4 = scmp.lt.s32.totalorder (!%p266_p2), %s1761_s26, 7 }
   0x7   : > { %p1766_p5 = scmp.ne.s32.totalorder (!%p266_p2), %s2273_s25, 0 }
   0xb   : > { %s308_s27 = scalar_select %p307_p3, %s2273_s25, 1 }
   0xc   : > { %s2745_s26 = smov (!%p317_p4, %s1761_s26), 7  ;;  %334 = sbr.rel (%p1766_p5) target bundleno = 19 (0x13), region = 52 }
   0xd   : > { %s1758_s28 = sshll.u32 %s308_s27, 3  ;;  %s1812_s29 = sshll.u32 %s308_s27, 4 }
   0xe   : > { %s2283_s9 = scalar_lea.vmem %s2736_s0, %s1758_s28  ;;  %s2288_s12 = scalar_lea.vmem %s2737_s1, %s1812_s29 }
   0xf   : > { %s1813_s13 = sshll.u32 %s2745_s26, 4  ;;  %s1765_s14 = sshll.u32 %s2745_s26, 3 }
  0x10   : > { %s2293_s17 = scalar_lea.vmem %s2738_s2, %s1813_s13  ;;  %s2298_s20 = scalar_lea.vmem %s2739_s3, %s1765_s14 }
  0x11   : > { %vm335_vm0 = vcmask 0   ;;  %v2222_v0 = vmov 0.0  }
  0x12   : > { %336 = vst.msk [vmem:[#allocation2] sm:$0x1] %vm335_vm0, %v2222_v0 }
  0x13 PF: > { %v350_v1 = vld [vmem:[%s2298_s20 + $0x10] sm:$0xff]  ;;  %v348_v2 = vld [vmem:[%s2298_s20] sm:$0xff]  ;;  %v2223_v3 = vmov 0   ;;  %v351_v4 = vld [vmem:[%s2298_s20 + $0x18] sm:$0xff]  ;;  %v2224_v8 = vmov 0.0   ;;  %v388_v19 = vlaneseq  ;;  %vm479_vm13 = vcmask 261120  }
  0x14   : > { %1987 = vset.pattern.permute.xlu1 %v2223_v3  ;;  %1986 = vset.pattern.permute.xlu0 %v2223_v3  ;;  %v349_v5 = vld [vmem:[%s2298_s20 + $0x8] sm:$0xff]  ;;  %v2308_v6 = vld [vmem:[%s2293_s17 + $0x30] sm:$0xff]  ;;  %v2311_v7 = vld [vmem:[%s2293_s17 + $0x38] sm:$0xff]  ;;  %vm774_vm14 = vcmask 130048   ;;  %vm666_vm15 = vcmask 64512   ;;  %vm1651_vm0 = vcmask 7168  }
  0x15   : > { %435 = vperm.xlu1 %1987, %v350_v1   ;;  %425 = vperm.xlu0 %1986, %v348_v2   ;;  %v2315_v9 = vld [vmem:[%s2293_s17 + $0x20] sm:$0xff]  ;;  %v2318_v10 = vld [vmem:[%s2293_s17 + $0x28] sm:$0xff]  ;;  %v2322_v11 = vld [vmem:[%s2293_s17 + $0x18] sm:$0xff]  ;;  %v575_v18 = vmax.f32 %v2308_v6, %v2311_v7  ;;  %v394_v20 = vand.u32 127, %v388_v19  ;;  %v389_v23 = vshrl.u32 %v388_v19, 7  ;;  %p1971_p6 = scmp.eq.s32.totalorder %s2273_s25, 1 }
  0x16   : > { %547 = vmatprep.mubr.f32.mxu1 %v2224_v8  ;;  %507 = vmatprep.subr.mxu1 %v2311_v7  ;;  %v2327_v12 = vld [vmem:[%s2293_s17 + $0x10] sm:$0xff]  ;;  %v341_v13 = vld [vmem:[%s2293_s17 + $0x8] sm:$0xff]  ;;  %v340_v14 = vld [vmem:[%s2293_s17] sm:$0xff]  ;;  %v572_v16 = vmax.f32 %v2315_v9, %v2318_v10 }
  0x17   : > { %508 = vmatpush1.msra.mxu1 %v2308_v6  ;;  %v566_v15 = vmax.f32 %v340_v14, %v341_v13  ;;  %v569_v17 = vmax.f32 %v2327_v12, %v2322_v11  ;;  %v395_v21 = vmul.u32 4, %v394_v20  ;;  %v390_v24 = vadd.s32 8, %v389_v23  ;;  %v2344_v29 = vld [vmem:[%s2740_s4 + $0x4] ss:$8 sps:$4 sm:$0xff]  }
  0x18   : > { %509 = vmatprep.subr.mxu1 %v2318_v10  ;;  %v391_v25 = vadd.s32 16, %v389_v23  ;;  %v392_v28 = vadd.s32 24, %v389_v23 }
  0x19   : > { %440 = vperm.xlu1 %1987, %v351_v4   ;;  %430 = vperm.xlu0 %1986, %v349_v5   ;;  %v400_v22 = vadd.s32 4, %v395_v21  ;;  %vm396_vm1 = vcmp.ge.s32.totalorder %v389_v23, %v395_v21  ;;  %vm397_vm4 = vcmp.ge.s32.totalorder %v390_v24, %v395_v21 }
  0x1a   : > { %510 = vmatpush1.msra.mxu1 %v2315_v9  ;;  %vm398_vm7 = vcmp.ge.s32.totalorder %v391_v25, %v395_v21  ;;  %vm399_vm10 = vcmp.ge.s32.totalorder %v392_v28, %v395_v21 }
  0x1b   : > { %511 = vmatprep.subr.mxu1 %v2322_v11  ;;  %vm401_vm2 = vcmp.lt.s32.totalorder %v389_v23, %v400_v22  ;;  %vm402_vm5 = vcmp.lt.s32.totalorder %v390_v24, %v400_v22  ;;  %vm403_vm8 = vcmp.lt.s32.totalorder %v391_v25, %v400_v22  ;;  %vm404_vm11 = vcmp.lt.s32.totalorder %v392_v28, %v400_v22 }
  0x1c   : > { %512 = vmatpush1.msra.mxu1 %v2327_v12  ;;  %vm405_vm3 = vmand %vm396_vm1, %vm401_vm2  ;;  %vm1670_vm1 = vcmask 0  }
  0x1d   : > { %513 = vmatprep.subr.mxu1 %v341_v13  ;;  %v2339_v26 = vsel %vm405_vm3, 1.0, %v2224_v8  ;;  %vm406_vm6 = vmand %vm397_vm4, %vm402_vm5 }
  0x1e   : > { %514 = vmatpush1.msra.mxu1 %v340_v14  ;;  %v2347_v31 = vsel %vm406_vm6, 1.0, %v2224_v8  ;;  %vm407_vm9 = vmand %vm398_vm7, %vm403_vm8  ;;  %1961 = vmatprep.mubr.msk.f32.mxu0 %vm666_vm15, %v2339_v26 }
  0x1f   : > { %792 = vmatprep.subr.bf16.mxu1 %v2344_v29  ;;  %v2351_v35 = vsel %vm407_vm9, 1.0, %v2224_v8  ;;  %vm408_vm12 = vmand %vm399_vm10, %vm404_vm11 }
  0x20   : > { %v2354_v37 = vsel %vm408_vm12, 1.0, %v2224_v8 }
  0x38   : > { %567 = vmax.xlane.f32.xlu0 %v566_v15  ;;  %v2403_v15 = vld [vmem:[%s2741_s5 + $0x70] sm:$0xff]  }
  0x3c   : > { %573 = vmax.xlane.f32.xlu0 %v572_v16 }
  0x3d   : > { %570 = vmax.xlane.f32.xlu1 %v569_v17 }
  0x40   : > { %576 = vmax.xlane.f32.xlu0 %v575_v18 }
  0x90   : > { %v426_v27 = vpop.permute.xlu0 %425  ;;  %v436_v32 = vpop.permute.xlu1 %435 }
  0x91   : > { %v443_v30 = vmul.f32 %v2339_v26, %v426_v27  ;;  %v445_v36 = vmul.f32 %v2351_v35, %v436_v32 }
  0x93   : > { %447 = vxpose.xlu1.b32.start [1/4] (short) (narrow) %v443_v30, 8 }
  0x94   : > { %v431_v33 = vpop.permute.xlu0 %430  ;;  %v441_v38 = vpop.permute.xlu1 %440 }
  0x95   : > { %v444_v34 = vmul.f32 %v2347_v31, %v431_v33  ;;  %v446_v39 = vmul.f32 %v2354_v37, %v441_v38 }
  0x97   : > { %448 = vxpose.xlu1.b32.cont [2/4] (short) (narrow) %v444_v34, 8 }
  0x9b   : > { %449 = vxpose.xlu1.b32.cont [3/4] (short) (narrow) %v445_v36, 8 }
  0x9f   : > { %450 = vxpose.xlu1.b32.end [4/4] (short) (narrow) %v446_v39, 8 }
  0xc1   : > { %v568_v40 = vpop.xlane.xlu0 %567 }
  0xc2   : > { %v578_v41 = vsub.f32 %v340_v14, %v568_v40  ;;  %v579_v42 = vsub.f32 %v341_v13, %v568_v40  ;;  %v2389_v13 = vld [vmem:[%s2741_s5 + $0x78] sm:$0xff]  }
  0xc3   : > { %v2394_v14 = vld [vmem:[%s2741_s5 + $0x38] sm:$0xff]  }
  0xc4   : > { %v586_v43 = vmul.f32 1.442695, %v578_v41  ;;  %v588_v44 = vmul.f32 1.442695, %v579_v42 }
  0xc5   : > { %v574_v45 = vpop.xlane.xlu0 %573 }
  0xc6   : > { %2010 = vpow2.f32 %v586_v43  ;;  %v571_v46 = vpop.xlane.xlu1 %570  ;;  %v582_v47 = vsub.f32 %v2315_v9, %v574_v45  ;;  %v583_v48 = vsub.f32 %v2318_v10, %v574_v45  ;;  %v2372_v9 = vld [vmem:[%s2740_s4] ss:$8 sps:$4 sm:$0xff]  }
  0xc7   : > { %2012 = vpow2.f32 %v588_v44  ;;  %v580_v49 = vsub.f32 %v2327_v12, %v571_v46  ;;  %v581_v50 = vsub.f32 %v2322_v11, %v571_v46  ;;  %v2225_v11 = vmov 1031814528   ;;  %v337_v12 = vld [vmem:[%s2283_s9] sm:$0xff] }
  0xc8   : > { %v594_v51 = vmul.f32 1.442695, %v582_v47  ;;  %v596_v54 = vmul.f32 1.442695, %v583_v48  ;;  %1959 = vmatprep.subr.mxu0 %v337_v12 }
  0xc9   : > { %v590_v52 = vmul.f32 1.442695, %v580_v49  ;;  %v592_v53 = vmul.f32 1.442695, %v581_v50  ;;  %v577_v55 = vpop.xlane.xlu0 %576  ;;  %1960 = vmatpush3.msra.mxu0 %v337_v12  ;;  %v2429_v50 = vld [vmem:[%s2741_s5 + $0x30] sm:$0xff]  }
  0xca   : > { %2014 = vpow2.f32 %v594_v51  ;;  %v584_v56 = vsub.f32 %v2308_v6, %v577_v55  ;;  %v585_v57 = vsub.f32 %v2311_v7, %v577_v55  ;;  %1962 = vmatmul.mubr.msk.f32.vlgmr.msra.gmra.mxu0 %vm666_vm15, %v2347_v31  ;;  %1819 = vmatprep.subr.bf16.mxu0 %v2389_v13  ;;  %v2446_v55 = vld [vmem:[%s2741_s5 + $0x28] sm:$0xff]  }
  0xcb   : > { %2016 = vpow2.f32 %v590_v52  ;;  %1964 = vmatprep.mubr.msk.f32.mxu0 %vm666_vm15, %v2351_v35  ;;  %1820 = vmatpush3.bf16.msra.mxu0 %v2394_v14 }
  0xcc   : > { %2018 = vpow2.f32 %v592_v53  ;;  %v598_v58 = vmul.f32 1.442695, %v584_v56  ;;  %v600_v59 = vmul.f32 1.442695, %v585_v57  ;;  %1821 = vmatprep.subr.bf16.mxu0 %v2403_v15  ;;  %v2439_v53 = vld [vmem:[%s2741_s5 + $0x68] sm:$0xff]   ;;  %v2453_v56 = vld [vmem:[%s2741_s5 + $0x60] sm:$0xff]  }
  0xcd   : > { %2020 = vpow2.f32 %v596_v54  ;;  %v2458_v57 = vld [vmem:[%s2741_s5 + $0x20] sm:$0xff]  }
  0xce   : > { %2022 = vpow2.f32 %v598_v58  ;;  %1965 = vmatmul.mubr.msk.f32.gmra.mxu0 %vm666_vm15, %v2354_v37  ;;  %v2465_v58 = vld [vmem:[%s2741_s5 + $0x58] sm:$0xff]  }
  0xcf   : > { %2024 = vpow2.f32 %v600_v59  ;;  %1822 = vmatpush3.bf16.msra.mxu0 %v2429_v50  ;;  %v2470_v59 = vld [vmem:[%s2741_s5 + $0x18] sm:$0xff]  }
  0xd0   : > { %1823 = vmatprep.subr.bf16.mxu0 %v2439_v53 }
  0xd3   : > { %v2011_v60 = vpop.eup %2010  ;;  %1824 = vmatpush3.bf16.msra.mxu0 %v2446_v55 }
  0xd4   : > { %v2013_v61 = vpop.eup %2012  ;;  %1825 = vmatprep.subr.bf16.mxu0 %v2453_v56 }
  0xd5   : > { %v602_v62 = vadd.f32 %v2013_v61, %v2011_v60 }
  0xd7   : > { %v2363_v63 = vpop.eup %2014  ;;  %603 = vadd.xlane.f32.xlu0 %v602_v62  ;;  %1826 = vmatpush3.bf16.msra.mxu0 %v2458_v57  ;;  %v2489_v62 = vld [vmem:[%s2741_s5 + $0x48] sm:$0xff]  }
  0xd8   : > { %v2017_v0 = vpop.eup %2016  ;;  %1827 = vmatprep.subr.bf16.mxu0 %v2465_v58 }
  0xd9   : > { %v2019_v1 = vpop.eup %2018 }
  0xda   : > { %v2021_v2 = vpop.eup %2020  ;;  %v605_v4 = vadd.f32 %v2019_v1, %v2017_v0 }
  0xdb   : > { %v2365_v5 = vpop.eup %2022  ;;  %v608_v6 = vadd.f32 %v2021_v2, %v2363_v63  ;;  %1828 = vmatpush3.bf16.msra.mxu0 %v2470_v59 }
  0xdc   : > { %606 = vadd.xlane.f32.xlu0 %v605_v4  ;;  %v2025_v7 = vpop.eup %2024  ;;  %v339_v4 = vld [vmem:[%s2288_s12 + $0x8] sm:$0xff] }
  0xdd   : > { %v611_v8 = vadd.f32 %v2025_v7, %v2365_v5 }
  0xe0   : > { %609 = vadd.xlane.f32.xlu0 %v608_v6  ;;  %v418_v6 = vadd.f32 1e-12, %v339_v4 }
  0xe4   : > { %612 = vadd.xlane.f32.xlu0 %v611_v8 }
 0x10f   : > { %v463_v10 = vpop.trf.xlu1 }
 0x110   : > { %1771 = vmatmul.mubr.msk.f32.vlgmr.msra.gmra.mxu1 %vm479_vm13, %v463_v10 }
 0x111   : > { %793 = vmatpush1.bf16.msra.mxu1 %v2372_v9  ;;  %810 = vmatprep.mubr.bf16.mxu1 %v2223_v3 }
 0x112   : > { %1026 = vmatprep.subr.bf16.mxu1 %v2344_v29 }
 0x114   : > { %1778 = vmatmul.mubr.msk.bf16.vlgmr.msra.gmra.mxu1 %vm774_vm14, %v2225_v11 }
 0x115   : > { %820 = vmatprep.mubr.bf16.mxu1 %v2223_v3  ;;  %1027 = vmatpush1.bf16.msra.mxu1 %v2372_v9 }
 0x116   : > { %1847 = vmatprep.subr.bf16.mxu1 %v2389_v13 }
 0x11c   : > { %1779 = vmatmul.mubr.msk.bf16.gmra.mxu1 %vm774_vm14, %v2225_v11 }
 0x11d   : > { %1044 = vmatprep.mubr.bf16.mxu1 %v2223_v3 }
 0x160   : > { %v604_v16 = vpop.xlane.xlu0 %603 }
 0x161   : > { %2026 = vrcp.f32 %v604_v16 }
 0x165   : > { %v607_v17 = vpop.xlane.xlu0 %606 }
 0x166   : > { %2028 = vrcp.f32 %v607_v17 }
 0x169   : > { %v610_v18 = vpop.xlane.xlu0 %609 }
 0x16a   : > { %2030 = vrcp.f32 %v610_v18 }
 0x16d   : > { %v613_v19 = vpop.xlane.xlu0 %612 }
 0x16e   : > { %v2027_v20 = vpop.eup %2026  ;;  %2032 = vrcp.f32 %v613_v19 }
 0x16f   : > { %v618_v21 = vmul.f32 %v2027_v20, %v2011_v60  ;;  %v619_v22 = vmul.f32 %v2027_v20, %v2013_v61  ;;  %v2477_v60 = vld [vmem:[%s2741_s5 + $0x50] sm:$0xff]  }
 0x170   : > { %v2482_v61 = vld [vmem:[%s2741_s5 + $0x10] sm:$0xff]   ;;  %1829 = vmatprep.subr.bf16.mxu0 %v2477_v60 }
 0x171   : > { %v626_v23 = vmul.f32 1.442695, %v618_v21  ;;  %v628_v24 = vmul.f32 1.442695, %v619_v22  ;;  %1830 = vmatpush3.bf16.msra.mxu0 %v2482_v61 }
 0x172   : > { %1831 = vmatprep.subr.bf16.mxu0 %v2489_v62 }
 0x173   : > { %v2029_v25 = vpop.eup %2028  ;;  %2034 = vpow2.f32 %v626_v23 }
 0x174   : > { %v620_v26 = vmul.f32 %v2029_v25, %v2017_v0  ;;  %v621_v27 = vmul.f32 %v2029_v25, %v2019_v1  ;;  %2036 = vpow2.f32 %v628_v24  ;;  %v2501_v0 = vld [vmem:[%s2741_s5 + $0x40] sm:$0xff]  }
 0x175   : > { %v2506_v1 = vld [vmem:[%s2741_s5] sm:$0xff]  }
 0x176   : > { %v630_v28 = vmul.f32 1.442695, %v620_v26  ;;  %v632_v30 = vmul.f32 1.442695, %v621_v27 }
 0x177   : > { %v2031_v31 = vpop.eup %2030 }
 0x178   : > { %v622_v32 = vmul.f32 %v2031_v31, %v2363_v63  ;;  %v623_v33 = vmul.f32 %v2031_v31, %v2021_v2  ;;  %2038 = vpow2.f32 %v630_v28  ;;  %v2494_v63 = vld [vmem:[%s2741_s5 + $0x8] sm:$0xff]   ;;  %v338_v2 = vld [vmem:[%s2288_s12] sm:$0xff] }
 0x179   : > { %2040 = vpow2.f32 %v632_v30  ;;  %1832 = vmatpush3.bf16.msra.mxu0 %v2494_v63 }
 0x17a   : > { %v634_v34 = vmul.f32 1.442695, %v622_v32  ;;  %v636_v35 = vmul.f32 1.442695, %v623_v33  ;;  %1833 = vmatprep.subr.bf16.mxu0 %v2501_v0 }
 0x17b   : > { %v2033_v36 = vpop.eup %2032 }
 0x17c   : > { %v624_v37 = vmul.f32 %v2033_v36, %v2365_v5  ;;  %v625_v38 = vmul.f32 %v2033_v36, %v2025_v7  ;;  %2042 = vpow2.f32 %v634_v34  ;;  %v417_v5 = vadd.f32 1e-12, %v338_v2 }
 0x17d   : > { %2044 = vpow2.f32 %v636_v35  ;;  %1834 = vmatpush3.bf16.msra.mxu0 %v2506_v1 }
 0x17e   : > { %v638_v39 = vmul.f32 1.442695, %v624_v37  ;;  %v640_v40 = vmul.f32 1.442695, %v625_v38  ;;  %1164 = vmatprep.subr.bf16.mxu0 %v2344_v29 }
 0x180   : > { %v2408_v41 = vpop.eup %2034  ;;  %2046 = vpow2.f32 %v638_v39 }
 0x181   : > { %v2410_v42 = vpop.eup %2036  ;;  %2048 = vpow2.f32 %v640_v40 }
 0x182   : > { %v642_v43 = vadd.f32 %v2410_v42, %v2408_v41  ;;  %2050 = vlog2.f32 %v417_v5 }
 0x183   : > { %2052 = vlog2.f32 %v418_v6 }
 0x184   : > { %643 = vadd.xlane.f32.xlu0 %v642_v43 }
 0x185   : > { %v2414_v44 = vpop.eup %2038 }
 0x186   : > { %v2416_v45 = vpop.eup %2040 }
 0x187   : > { %v645_v46 = vadd.f32 %v2416_v45, %v2414_v44 }
 0x189   : > { %v2420_v47 = vpop.eup %2042  ;;  %646 = vadd.xlane.f32.xlu0 %v645_v46 }
 0x18a   : > { %v2422_v48 = vpop.eup %2044 }
 0x18b   : > { %v648_v49 = vadd.f32 %v2422_v48, %v2420_v47 }
 0x18d   : > { %v2431_v51 = vpop.eup %2046  ;;  %649 = vadd.xlane.f32.xlu0 %v648_v49 }
 0x18e   : > { %v2434_v52 = vpop.eup %2048 }
 0x18f   : > { %v651_v54 = vadd.f32 %v2434_v52, %v2431_v51  ;;  %v2051_v7 = vpop.eup %2050 }
 0x190   : > { %v2053_v8 = vpop.eup %2052  ;;  %v420_v10 = vmul.f32 0.6931472, %v2051_v7 }
 0x191   : > { %652 = vadd.xlane.f32.xlu0 %v651_v54  ;;  %v422_v11 = vmul.f32 0.6931472, %v2053_v8 }
 0x1d0   : > { %v549_v12 = vpop.f32.mrf.mxu1 }
 0x1d1   : > { %v554_v16 = vmul.f32 %v549_v12, %v420_v10 }
 0x1d2   : > { %v551_v17 = vpop.f32.mrf.mxu1 }
 0x1d3   : > { %v555_v18 = vmul.f32 %v551_v17, %v422_v11 }
 0x1d4   : > { %v812_v20 = vpop.f32.mrf.mxu1 }
 0x1d5   : > { %v2513_v19 = vadd.f32 %v555_v18, %v554_v16  ;;  %v813_v25 = vadd.f32 1e-12, %v812_v20 }
 0x1d6   : > { %v814_v21 = vpop.f32.mrf.mxu1 }
 0x1d7   : > { %v815_v27 = vadd.f32 1e-12, %v814_v21 }
 0x1d8   : > { %v816_v22 = vpop.f32.mrf.mxu1 }
 0x1d9   : > { %v817_v30 = vadd.f32 1e-12, %v816_v22 }
 0x1da   : > { %v818_v23 = vpop.f32.mrf.mxu1 }
 0x1db   : > { %v819_v31 = vadd.f32 1e-12, %v818_v23 }
 0x1dc   : > { %v822_v24 = vpop.f32.mrf.mxu1 }
 0x1dd   : > { %v823_v34 = vadd.f32 1e-12, %v822_v24 }
 0x1de   : > { %v824_v28 = vpop.f32.mrf.mxu1 }
 0x1df   : > { %v825_v35 = vadd.f32 1e-12, %v824_v28 }
 0x1e0   : > { %v826_v33 = vpop.f32.mrf.mxu1 }
 0x1e1   : > { %v827_v38 = vadd.f32 1e-12, %v826_v33 }
 0x1e2   : > { %v828_v36 = vpop.f32.mrf.mxu1 }
 0x1e3   : > { %v829_v39 = vadd.f32 1e-12, %v828_v36 }
 0x20d   : > { %v644_v26 = vpop.xlane.xlu0 %643 }
 0x20e   : > { %2054 = vrcp.f32 %v644_v26 }
 0x20f   : > { %2056 = vrcp.f32 %v813_v25 }
 0x210   : > { %2058 = vrcp.f32 %v815_v27 }
 0x212   : > { %v647_v32 = vpop.xlane.xlu0 %646 }
 0x213   : > { %2060 = vrcp.f32 %v647_v32 }
 0x214   : > { %2062 = vrcp.f32 %v817_v30 }
 0x215   : > { %2064 = vrcp.f32 %v819_v31 }
 0x216   : > { %v650_v37 = vpop.xlane.xlu0 %649 }
 0x217   : > { %2066 = vrcp.f32 %v650_v37 }
 0x218   : > { %2068 = vrcp.f32 %v823_v34 }
 0x219   : > { %2070 = vrcp.f32 %v825_v35 }
 0x21a   : > { %v653_v40 = vpop.xlane.xlu0 %652 }
 0x21b   : > { %2072 = vrcp.f32 %v653_v40  ;;  %v2055_v43 = vpop.eup %2054 }
 0x21c   : > { %2074 = vrcp.f32 %v827_v38  ;;  %v2057_v46 = vpop.eup %2056  ;;  %v2516_v54 = vmul.f32 %v2055_v43, %v2408_v41  ;;  %v2519_v2 = vmul.f32 %v2055_v43, %v2410_v42 }
 0x21d   : > { %2076 = vrcp.f32 %v829_v39  ;;  %v2059_v49 = vpop.eup %2058 }
 0x21e   : > { %v840_v10 = vmul.f32 %v2059_v49, %v2519_v2  ;;  %v839_v12 = vmul.f32 %v2057_v46, %v2516_v54 }
 0x220   : > { %v2061_v4 = vpop.eup %2060 }
 0x221   : > { %v2063_v5 = vpop.eup %2062  ;;  %v2522_v6 = vmul.f32 %v2061_v4, %v2414_v44  ;;  %v2525_v7 = vmul.f32 %v2061_v4, %v2416_v45 }
 0x222   : > { %v2065_v8 = vpop.eup %2064 }
 0x223   : > { %v842_v11 = vmul.f32 %v2065_v8, %v2525_v7  ;;  %v841_v41 = vmul.f32 %v2063_v5, %v2522_v6 }
 0x224   : > { %v2067_v16 = vpop.eup %2066 }
 0x225   : > { %v848_v42 = vpack.c.bf16 %v842_v11, %v840_v10  ;;  %v847_v17 = vpack.c.bf16 %v841_v41, %v839_v12  ;;  %v2069_v18 = vpop.eup %2068  ;;  %v2532_v44 = vmul.f32 %v2067_v16, %v2420_v47  ;;  %v2535_v45 = vmul.f32 %v2067_v16, %v2422_v48 }
 0x226   : > { %v2071_v20 = vpop.eup %2070 }
 0x227   : > { %979 = vmatprep.mubr.bf16.mxu0 %v848_v42  ;;  %v844_v47 = vmul.f32 %v2071_v20, %v2535_v45  ;;  %v843_v26 = vmul.f32 %v2069_v18, %v2532_v44 }
 0x228   : > { %v2073_v21 = vpop.eup %2072  ;;  %980 = vmatmul.mubr.bf16.vlgmr.msra.gmra.mxu0 %v847_v17 }
 0x229   : > { %v2075_v22 = vpop.eup %2074  ;;  %v2538_v23 = vmul.f32 %v2073_v21, %v2431_v51  ;;  %v2541_v24 = vmul.f32 %v2073_v21, %v2434_v52  ;;  %1165 = vmatpush1.bf16.msra.mxu0 %v2372_v9  ;;  %v2550_v51 = vpop.f32.mrf.mxu0 }
 0x22a   : > { %v2077_v25 = vpop.eup %2076  ;;  %1875 = vmatprep.subr.bf16.mxu0 %v2389_v13 }
 0x22b   : > { %v846_v48 = vmul.f32 %v2077_v25, %v2541_v24  ;;  %v845_v27 = vmul.f32 %v2075_v22, %v2538_v23  ;;  %v2552_v52 = vpop.f32.mrf.mxu0 }
 0x22d   : > { %v850_v28 = vpack.c.bf16 %v846_v48, %v844_v47  ;;  %v849_v30 = vpack.c.bf16 %v845_v27, %v843_v26  ;;  %v2554_v31 = vpop.f32.mrf.mxu0 }
 0x22f   : > { %987 = vmatprep.mubr.bf16.mxu0 %v850_v28  ;;  %v2556_v32 = vpop.f32.mrf.mxu0 }
 0x230   : > { %988 = vmatmul.mubr.bf16.gmra.mxu0 %v849_v30 }
 0x231   : > { %1182 = vmatprep.mubr.bf16.mxu0 %v2223_v3 }
 0x2e8   : > { %v1835_v33 = vpop.f32.mrf.mxu0 }
 0x2ea   : > { %v1836_v34 = vpop.f32.mrf.mxu0 }
 0x2eb   : > { %v1837_v35 = vadd.f32 %v1836_v34, %v1835_v33 }
 0x2ec   : > { %v1838_v36 = vpop.f32.mrf.mxu0 }
 0x2ed   : > { %v982_v37 = vadd.f32 1e-12, %v1837_v35 }
 0x2ee   : > { %v1839_v38 = vpop.f32.mrf.mxu0 }
 0x2ef   : > { %v1840_v39 = vadd.f32 %v1839_v38, %v1838_v36  ;;  %2078 = vrcp.f32 %v982_v37 }
 0x2f0   : > { %v1841_v40 = vpop.f32.mrf.mxu0 }
 0x2f1   : > { %v985_v43 = vadd.f32 1e-12, %v1840_v39 }
 0x2f2   : > { %v1842_v46 = vpop.f32.mrf.mxu0 }
 0x2f3   : > { %2080 = vrcp.f32 %v985_v43  ;;  %v1843_v49 = vadd.f32 %v1842_v46, %v1841_v40 }
 0x2f4   : > { %v1844_v4 = vpop.f32.mrf.mxu0 }
 0x2f5   : > { %v990_v5 = vadd.f32 1e-12, %v1843_v49 }
 0x2f6   : > { %v1845_v8 = vpop.f32.mrf.mxu0 }
 0x2f7   : > { %v1846_v10 = vadd.f32 %v1845_v8, %v1844_v4  ;;  %2082 = vrcp.f32 %v990_v5 }
 0x2f9   : > { %v993_v11 = vadd.f32 1e-12, %v1846_v10 }
 0x2fb   : > { %2084 = vrcp.f32 %v993_v11 }
 0x2fc   : > { %v2079_v12 = vpop.eup %2078 }
 0x2fd   : > { %v1000_v16 = vmul.f32 %v2079_v12, %v2552_v52 }
 0x300   : > { %v2081_v41 = vpop.eup %2080 }
 0x301   : > { %v1001_v42 = vmul.f32 %v2081_v41, %v2550_v51 }
 0x303   : > { %v1004_v17 = vpack.c.bf16 %v1001_v42, %v1000_v16 }
 0x304   : > { %v2083_v18 = vpop.eup %2082 }
 0x305   : > { %1796 = vmatmul.mubr.msk.bf16.vlgmr.msra.gmra.mxu1 %vm774_vm14, %v1004_v17  ;;  %v1002_v21 = vmul.f32 %v2083_v18, %v2556_v32 }
 0x306   : > { %1054 = vmatprep.mubr.bf16.mxu1 %v2223_v3  ;;  %1848 = vmatpush3.bf16.msra.mxu1 %v2394_v14 }
 0x307   : > { %1849 = vmatprep.subr.bf16.mxu1 %v2403_v15 }
 0x308   : > { %v2085_v20 = vpop.eup %2084 }
 0x309   : > { %v1003_v22 = vmul.f32 %v2085_v20, %v2554_v31 }
 0x30a   : > { %1850 = vmatpush3.bf16.msra.mxu1 %v2429_v50 }
 0x30b   : > { %v1005_v25 = vpack.c.bf16 %v1003_v22, %v1002_v21  ;;  %1851 = vmatprep.subr.bf16.mxu1 %v2439_v53 }
 0x30d   : > { %1797 = vmatmul.mubr.msk.bf16.gmra.mxu1 %vm774_vm14, %v1005_v25 }
 0x30e   : > { %1852 = vmatpush3.bf16.msra.mxu1 %v2446_v55 }
 0x30f   : > { %1853 = vmatprep.subr.bf16.mxu1 %v2453_v56 }
 0x312   : > { %1854 = vmatpush3.bf16.msra.mxu1 %v2458_v57 }
 0x313   : > { %1855 = vmatprep.subr.bf16.mxu1 %v2465_v58 }
 0x316   : > { %1856 = vmatpush3.bf16.msra.mxu1 %v2470_v59 }
 0x317   : > { %1857 = vmatprep.subr.bf16.mxu1 %v2477_v60 }
 0x31a   : > { %1858 = vmatpush3.bf16.msra.mxu1 %v2482_v61 }
 0x31b   : > { %1859 = vmatprep.subr.bf16.mxu1 %v2489_v62 }
 0x31e   : > { %1860 = vmatpush3.bf16.msra.mxu1 %v2494_v63 }
 0x31f   : > { %1861 = vmatprep.subr.bf16.mxu1 %v2501_v0 }
 0x322   : > { %1862 = vmatpush3.bf16.msra.mxu1 %v2506_v1 }
 0x323   : > { %1302 = vmatprep.subr.bf16.mxu1 %v2344_v29 }
 0x3c5   : > { %v1046_v47 = vpop.f32.mrf.mxu1 }
 0x3c6   : > { %v1047_v27 = vadd.f32 1e-12, %v1046_v47 }
 0x3c7   : > { %v1048_v48 = vpop.f32.mrf.mxu1 }
 0x3c8   : > { %v1049_v26 = vadd.f32 1e-12, %v1048_v48 }
 0x3c9   : > { %v1050_v28 = vpop.f32.mrf.mxu1 }
 0x3ca   : > { %v1051_v30 = vadd.f32 1e-12, %v1050_v28  ;;  %2086 = vrcp.f32 %v1049_v26 }
 0x3cb   : > { %v1052_v33 = vpop.f32.mrf.mxu1 }
 0x3cc   : > { %2088 = vrcp.f32 %v1051_v30  ;;  %v1053_v34 = vadd.f32 1e-12, %v1052_v33 }
 0x3cd   : > { %2090 = vrcp.f32 %v1047_v27  ;;  %v1056_v35 = vpop.f32.mrf.mxu1 }
 0x3ce   : > { %2092 = vrcp.f32 %v1053_v34  ;;  %v1057_v38 = vadd.f32 1e-12, %v1056_v35 }
 0x3cf   : > { %v1058_v36 = vpop.f32.mrf.mxu1 }
 0x3d0   : > { %v1059_v37 = vadd.f32 1e-12, %v1058_v36 }
 0x3d1   : > { %v1060_v39 = vpop.f32.mrf.mxu1 }
 0x3d2   : > { %v1061_v40 = vadd.f32 1e-12, %v1060_v39  ;;  %2094 = vrcp.f32 %v1059_v37 }
 0x3d3   : > { %v1062_v43 = vpop.f32.mrf.mxu1 }
 0x3d4   : > { %2096 = vrcp.f32 %v1061_v40  ;;  %v1063_v46 = vadd.f32 1e-12, %v1062_v43 }
 0x3d5   : > { %2098 = vrcp.f32 %v1057_v38 }
 0x3d6   : > { %2100 = vrcp.f32 %v1063_v46 }
 0x3d7   : > { %v2087_v49 = vpop.eup %2086 }
 0x3d8   : > { %v1074_v11 = vmul.f32 %v2087_v49, %v2519_v2 }
 0x3d9   : > { %v2089_v4 = vpop.eup %2088 }
 0x3da   : > { %v2091_v5 = vpop.eup %2090  ;;  %v1075_v10 = vmul.f32 %v2089_v4, %v2522_v6 }
 0x3db   : > { %v2093_v8 = vpop.eup %2092  ;;  %v1073_v41 = vmul.f32 %v2091_v5, %v2516_v54 }
 0x3dc   : > { %v1076_v12 = vmul.f32 %v2093_v8, %v2525_v7 }
 0x3dd   : > { %v1081_v42 = vpack.c.bf16 %v1075_v10, %v1073_v41 }
 0x3de   : > { %v1082_v16 = vpack.c.bf16 %v1076_v12, %v1074_v11 }
 0x3df   : > { %v2095_v17 = vpop.eup %2094 }
 0x3e0   : > { %1117 = vmatprep.mubr.bf16.mxu1 %v1082_v16  ;;  %v1078_v25 = vmul.f32 %v2095_v17, %v2535_v45 }
 0x3e1   : > { %v2097_v18 = vpop.eup %2096  ;;  %1118 = vmatmul.mubr.bf16.vlgmr.msra.gmra.mxu1 %v1081_v42 }
 0x3e2   : > { %v2099_v20 = vpop.eup %2098  ;;  %1303 = vmatpush1.bf16.msra.mxu1 %v2372_v9  ;;  %v1079_v22 = vmul.f32 %v2097_v18, %v2538_v23 }
 0x3e3   : > { %v2101_v21 = vpop.eup %2100  ;;  %1903 = vmatprep.subr.bf16.mxu1 %v2389_v13  ;;  %v1077_v48 = vmul.f32 %v2099_v20, %v2532_v44 }
 0x3e4   : > { %v1080_v47 = vmul.f32 %v2101_v21, %v2541_v24 }
 0x3e5   : > { %v1083_v27 = vpack.c.bf16 %v1079_v22, %v1077_v48 }
 0x3e6   : > { %v1084_v26 = vpack.c.bf16 %v1080_v47, %v1078_v25 }
 0x3e8   : > { %1125 = vmatprep.mubr.bf16.mxu1 %v1084_v26 }
 0x3e9   : > { %1126 = vmatmul.mubr.bf16.gmra.mxu1 %v1083_v27 }
 0x3ea   : > { %1320 = vmatprep.mubr.bf16.mxu1 %v2223_v3 }
 0x4a1   : > { %v1863_v28 = vpop.f32.mrf.mxu1 }
 0x4a3   : > { %v1864_v30 = vpop.f32.mrf.mxu1 }
 0x4a4   : > { %v1865_v33 = vadd.f32 %v1864_v30, %v1863_v28 }
 0x4a5   : > { %v1866_v34 = vpop.f32.mrf.mxu1 }
 0x4a6   : > { %v1120_v35 = vadd.f32 1e-12, %v1865_v33 }
 0x4a7   : > { %v1867_v36 = vpop.f32.mrf.mxu1 }
 0x4a8   : > { %v1868_v37 = vadd.f32 %v1867_v36, %v1866_v34  ;;  %2102 = vrcp.f32 %v1120_v35 }
 0x4a9   : > { %v1869_v38 = vpop.f32.mrf.mxu1 }
 0x4aa   : > { %v1123_v39 = vadd.f32 1e-12, %v1868_v37 }
 0x4ab   : > { %v1870_v40 = vpop.f32.mrf.mxu1 }
 0x4ac   : > { %2104 = vrcp.f32 %v1123_v39  ;;  %v1871_v43 = vadd.f32 %v1870_v40, %v1869_v38 }
 0x4ad   : > { %v1872_v46 = vpop.f32.mrf.mxu1 }
 0x4ae   : > { %v1128_v49 = vadd.f32 1e-12, %v1871_v43 }
 0x4af   : > { %v1873_v4 = vpop.f32.mrf.mxu1 }
 0x4b0   : > { %v1874_v5 = vadd.f32 %v1873_v4, %v1872_v46  ;;  %2106 = vrcp.f32 %v1128_v49 }
 0x4b2   : > { %v1131_v8 = vadd.f32 1e-12, %v1874_v5 }
 0x4b4   : > { %2108 = vrcp.f32 %v1131_v8 }
 0x4b5   : > { %v2103_v10 = vpop.eup %2102 }
 0x4b6   : > { %v1138_v12 = vmul.f32 %v2103_v10, %v2552_v52 }
 0x4b9   : > { %v2105_v11 = vpop.eup %2104 }
 0x4ba   : > { %v1139_v41 = vmul.f32 %v2105_v11, %v2550_v51 }
 0x4bc   : > { %v1142_v16 = vpack.c.bf16 %v1139_v41, %v1138_v12 }
 0x4bd   : > { %v2107_v42 = vpop.eup %2106 }
 0x4be   : > { %1798 = vmatmul.mubr.msk.bf16.vlgmr.msra.gmra.mxu0 %vm774_vm14, %v1142_v16  ;;  %v1140_v18 = vmul.f32 %v2107_v42, %v2556_v32 }
 0x4bf   : > { %1192 = vmatprep.mubr.bf16.mxu0 %v2223_v3  ;;  %1876 = vmatpush3.bf16.msra.mxu0 %v2394_v14 }
 0x4c0   : > { %1877 = vmatprep.subr.bf16.mxu0 %v2403_v15 }
 0x4c1   : > { %v2109_v17 = vpop.eup %2108 }
 0x4c2   : > { %v1141_v20 = vmul.f32 %v2109_v17, %v2554_v31 }
 0x4c3   : > { %1878 = vmatpush3.bf16.msra.mxu0 %v2429_v50 }
 0x4c4   : > { %v1143_v21 = vpack.c.bf16 %v1141_v20, %v1140_v18  ;;  %1879 = vmatprep.subr.bf16.mxu0 %v2439_v53 }
 0x4c6   : > { %1799 = vmatmul.mubr.msk.bf16.gmra.mxu0 %vm774_vm14, %v1143_v21 }
 0x4c7   : > { %1880 = vmatpush3.bf16.msra.mxu0 %v2446_v55 }
 0x4c8   : > { %1881 = vmatprep.subr.bf16.mxu0 %v2453_v56 }
 0x4cb   : > { %1882 = vmatpush3.bf16.msra.mxu0 %v2458_v57 }
 0x4cc   : > { %1883 = vmatprep.subr.bf16.mxu0 %v2465_v58 }
 0x4cf   : > { %1884 = vmatpush3.bf16.msra.mxu0 %v2470_v59 }
 0x4d0   : > { %1885 = vmatprep.subr.bf16.mxu0 %v2477_v60 }
 0x4d3   : > { %1886 = vmatpush3.bf16.msra.mxu0 %v2482_v61 }
 0x4d4   : > { %1887 = vmatprep.subr.bf16.mxu0 %v2489_v62 }
 0x4d7   : > { %1888 = vmatpush3.bf16.msra.mxu0 %v2494_v63 }
 0x4d8   : > { %1889 = vmatprep.subr.bf16.mxu0 %v2501_v0 }
 0x4db   : > { %1890 = vmatpush3.bf16.msra.mxu0 %v2506_v1 }
 0x4dc   : > { %1440 = vmatprep.subr.bf16.mxu0 %v2344_v29 }
 0x57e   : > { %v1184_v22 = vpop.f32.mrf.mxu0 }
 0x57f   : > { %v1185_v48 = vadd.f32 1e-12, %v1184_v22 }
 0x580   : > { %v1186_v25 = vpop.f32.mrf.mxu0 }
 0x581   : > { %v1187_v47 = vadd.f32 1e-12, %v1186_v25 }
 0x582   : > { %v1188_v26 = vpop.f32.mrf.mxu0 }
 0x583   : > { %v1189_v27 = vadd.f32 1e-12, %v1188_v26  ;;  %2110 = vrcp.f32 %v1187_v47 }
 0x584   : > { %v1190_v28 = vpop.f32.mrf.mxu0 }
 0x585   : > { %2112 = vrcp.f32 %v1189_v27  ;;  %v1191_v30 = vadd.f32 1e-12, %v1190_v28 }
 0x586   : > { %2114 = vrcp.f32 %v1185_v48  ;;  %v1194_v33 = vpop.f32.mrf.mxu0 }
 0x587   : > { %2116 = vrcp.f32 %v1191_v30  ;;  %v1195_v36 = vadd.f32 1e-12, %v1194_v33 }
 0x588   : > { %v1196_v34 = vpop.f32.mrf.mxu0 }
 0x589   : > { %v1197_v35 = vadd.f32 1e-12, %v1196_v34 }
 0x58a   : > { %v1198_v37 = vpop.f32.mrf.mxu0 }
 0x58b   : > { %v1199_v38 = vadd.f32 1e-12, %v1198_v37  ;;  %2118 = vrcp.f32 %v1197_v35 }
 0x58c   : > { %v1200_v29 = vpop.f32.mrf.mxu0 }
 0x58d   : > { %2120 = vrcp.f32 %v1199_v38  ;;  %v1201_v39 = vadd.f32 1e-12, %v1200_v29 }
 0x58e   : > { %2122 = vrcp.f32 %v1195_v36 }
 0x58f   : > { %2124 = vrcp.f32 %v1201_v39 }
 0x590   : > { %v2111_v40 = vpop.eup %2110 }
 0x591   : > { %v1212_v5 = vmul.f32 %v2111_v40, %v2519_v2 }
 0x592   : > { %v2113_v43 = vpop.eup %2112 }
 0x593   : > { %v2115_v46 = vpop.eup %2114  ;;  %v1213_v4 = vmul.f32 %v2113_v43, %v2522_v6 }
 0x594   : > { %v2117_v49 = vpop.eup %2116  ;;  %v1211_v10 = vmul.f32 %v2115_v46, %v2516_v54 }
 0x595   : > { %v1214_v8 = vmul.f32 %v2117_v49, %v2525_v7 }
 0x596   : > { %v1219_v12 = vpack.c.bf16 %v1213_v4, %v1211_v10 }
 0x597   : > { %v1220_v11 = vpack.c.bf16 %v1214_v8, %v1212_v5 }
 0x598   : > { %v2119_v41 = vpop.eup %2118 }
 0x599   : > { %1255 = vmatprep.mubr.bf16.mxu0 %v1220_v11  ;;  %v1216_v20 = vmul.f32 %v2119_v41, %v2535_v45 }
 0x59a   : > { %v2121_v16 = vpop.eup %2120  ;;  %1256 = vmatmul.mubr.bf16.vlgmr.msra.gmra.mxu0 %v1219_v12 }
 0x59b   : > { %v2123_v42 = vpop.eup %2122  ;;  %1441 = vmatpush1.bf16.msra.mxu0 %v2372_v9  ;;  %v1217_v18 = vmul.f32 %v2121_v16, %v2538_v23 }
 0x59c   : > { %v2125_v17 = vpop.eup %2124  ;;  %1931 = vmatprep.subr.bf16.mxu0 %v2389_v13  ;;  %v1215_v22 = vmul.f32 %v2123_v42, %v2532_v44 }
 0x59d   : > { %v1218_v21 = vmul.f32 %v2125_v17, %v2541_v24 }
 0x59e   : > { %v1221_v47 = vpack.c.bf16 %v1217_v18, %v1215_v22 }
 0x59f   : > { %v1222_v25 = vpack.c.bf16 %v1218_v21, %v1216_v20 }
 0x5a1   : > { %1263 = vmatprep.mubr.bf16.mxu0 %v1222_v25 }
 0x5a2   : > { %1264 = vmatmul.mubr.bf16.gmra.mxu0 %v1221_v47 }
 0x5a3   : > { %1458 = vmatprep.mubr.bf16.mxu0 %v2223_v3 }
 0x65a   : > { %v1891_v48 = vpop.f32.mrf.mxu0 }
 0x65c   : > { %v1892_v26 = vpop.f32.mrf.mxu0 }
 0x65d   : > { %v1893_v9 = vadd.f32 %v1892_v26, %v1891_v48 }
 0x65e   : > { %v1894_v27 = vpop.f32.mrf.mxu0 }
 0x65f   : > { %v1258_v28 = vadd.f32 1e-12, %v1893_v9 }
 0x660   : > { %v1895_v30 = vpop.f32.mrf.mxu0 }
 0x661   : > { %v1896_v33 = vadd.f32 %v1895_v30, %v1894_v27  ;;  %2126 = vrcp.f32 %v1258_v28 }
 0x662   : > { %v1897_v13 = vpop.f32.mrf.mxu0 }
 0x663   : > { %v1261_v34 = vadd.f32 1e-12, %v1896_v33 }
 0x664   : > { %v1898_v35 = vpop.f32.mrf.mxu0 }
 0x665   : > { %2128 = vrcp.f32 %v1261_v34  ;;  %v1899_v36 = vadd.f32 %v1898_v35, %v1897_v13 }
 0x666   : > { %v1900_v37 = vpop.f32.mrf.mxu0 }
 0x667   : > { %v1266_v38 = vadd.f32 1e-12, %v1899_v36 }
 0x668   : > { %v1901_v29 = vpop.f32.mrf.mxu0 }
 0x669   : > { %v1902_v39 = vadd.f32 %v1901_v29, %v1900_v37  ;;  %2130 = vrcp.f32 %v1266_v38 }
 0x66b   : > { %v1269_v40 = vadd.f32 1e-12, %v1902_v39 }
 0x66d   : > { %2132 = vrcp.f32 %v1269_v40 }
 0x66e   : > { %v2127_v43 = vpop.eup %2126 }
 0x66f   : > { %v1276_v49 = vmul.f32 %v2127_v43, %v2552_v52 }
 0x672   : > { %v2129_v46 = vpop.eup %2128 }
 0x673   : > { %v1277_v4 = vmul.f32 %v2129_v46, %v2550_v51 }
 0x675   : > { %v1280_v5 = vpack.c.bf16 %v1277_v4, %v1276_v49 }
 0x676   : > { %v2131_v8 = vpop.eup %2130 }
 0x677   : > { %1800 = vmatmul.mubr.msk.bf16.vlgmr.msra.gmra.mxu1 %vm774_vm14, %v1280_v5  ;;  %v1278_v11 = vmul.f32 %v2131_v8, %v2556_v32 }
 0x678   : > { %1330 = vmatprep.mubr.bf16.mxu1 %v2223_v3  ;;  %1904 = vmatpush3.bf16.msra.mxu1 %v2394_v14 }
 0x679   : > { %1905 = vmatprep.subr.bf16.mxu1 %v2403_v15 }
 0x67a   : > { %v2133_v10 = vpop.eup %2132 }
 0x67b   : > { %v1279_v12 = vmul.f32 %v2133_v10, %v2554_v31 }
 0x67c   : > { %1906 = vmatpush3.bf16.msra.mxu1 %v2429_v50 }
 0x67d   : > { %v1281_v41 = vpack.c.bf16 %v1279_v12, %v1278_v11  ;;  %1907 = vmatprep.subr.bf16.mxu1 %v2439_v53 }
 0x67f   : > { %1801 = vmatmul.mubr.msk.bf16.gmra.mxu1 %vm774_vm14, %v1281_v41 }
 0x680   : > { %1908 = vmatpush3.bf16.msra.mxu1 %v2446_v55 }
 0x681   : > { %1909 = vmatprep.subr.bf16.mxu1 %v2453_v56 }
 0x684   : > { %1910 = vmatpush3.bf16.msra.mxu1 %v2458_v57 }
 0x685   : > { %1911 = vmatprep.subr.bf16.mxu1 %v2465_v58 }
 0x688   : > { %1912 = vmatpush3.bf16.msra.mxu1 %v2470_v59 }
 0x689   : > { %1913 = vmatprep.subr.bf16.mxu1 %v2477_v60 }
 0x68c   : > { %1914 = vmatpush3.bf16.msra.mxu1 %v2482_v61 }
 0x68d   : > { %1915 = vmatprep.subr.bf16.mxu1 %v2489_v62 }
 0x690   : > { %1916 = vmatpush3.bf16.msra.mxu1 %v2494_v63 }
 0x691   : > { %1917 = vmatprep.subr.bf16.mxu1 %v2501_v0 }
 0x694   : > { %1918 = vmatpush3.bf16.msra.mxu1 %v2506_v1 }
 0x737   : > { %v1322_v16 = vpop.f32.mrf.mxu1 }
 0x738   : > { %v1323_v18 = vadd.f32 1e-12, %v1322_v16 }
 0x739   : > { %v1324_v42 = vpop.f32.mrf.mxu1 }
 0x73a   : > { %v1325_v17 = vadd.f32 1e-12, %v1324_v42 }
 0x73b   : > { %v1326_v20 = vpop.f32.mrf.mxu1 }
 0x73c   : > { %v1327_v21 = vadd.f32 1e-12, %v1326_v20  ;;  %2134 = vrcp.f32 %v1325_v17 }
 0x73d   : > { %v1328_v22 = vpop.f32.mrf.mxu1 }
 0x73e   : > { %2136 = vrcp.f32 %v1327_v21  ;;  %v1329_v25 = vadd.f32 1e-12, %v1328_v22 }
 0x73f   : > { %2138 = vrcp.f32 %v1323_v18  ;;  %v1332_v47 = vpop.f32.mrf.mxu1 }
 0x740   : > { %2140 = vrcp.f32 %v1329_v25  ;;  %v1333_v9 = vadd.f32 1e-12, %v1332_v47 }
 0x741   : > { %v1334_v48 = vpop.f32.mrf.mxu1 }
 0x742   : > { %v1335_v26 = vadd.f32 1e-12, %v1334_v48 }
 0x743   : > { %v1336_v27 = vpop.f32.mrf.mxu1 }
 0x744   : > { %v1337_v28 = vadd.f32 1e-12, %v1336_v27  ;;  %2142 = vrcp.f32 %v1335_v26 }
 0x745   : > { %v1338_v30 = vpop.f32.mrf.mxu1 }
 0x746   : > { %2144 = vrcp.f32 %v1337_v28  ;;  %v1339_v33 = vadd.f32 1e-12, %v1338_v30 }
 0x747   : > { %2146 = vrcp.f32 %v1333_v9 }
 0x748   : > { %2148 = vrcp.f32 %v1339_v33 }
 0x749   : > { %v2135_v13 = vpop.eup %2134 }
 0x74a   : > { %v1350_v38 = vmul.f32 %v2135_v13, %v2519_v2 }
 0x74b   : > { %v2137_v34 = vpop.eup %2136 }
 0x74c   : > { %v2139_v35 = vpop.eup %2138  ;;  %v1351_v37 = vmul.f32 %v2137_v34, %v2522_v6 }
 0x74d   : > { %v2141_v36 = vpop.eup %2140  ;;  %v1349_v39 = vmul.f32 %v2139_v35, %v2516_v54 }
 0x74e   : > { %v1352_v29 = vmul.f32 %v2141_v36, %v2525_v7 }
 0x74f   : > { %v1357_v43 = vpack.c.bf16 %v1351_v37, %v1349_v39 }
 0x750   : > { %v1358_v40 = vpack.c.bf16 %v1352_v29, %v1350_v38 }
 0x751   : > { %v2143_v46 = vpop.eup %2142 }
 0x752   : > { %1393 = vmatprep.mubr.bf16.mxu1 %v1358_v40  ;;  %v1354_v10 = vmul.f32 %v2143_v46, %v2535_v45 }
 0x753   : > { %v2145_v49 = vpop.eup %2144  ;;  %1394 = vmatmul.mubr.bf16.vlgmr.msra.gmra.mxu1 %v1357_v43 }
 0x754   : > { %v2147_v4 = vpop.eup %2146  ;;  %v1355_v8 = vmul.f32 %v2145_v49, %v2538_v23 }
 0x755   : > { %v2149_v5 = vpop.eup %2148  ;;  %v1353_v12 = vmul.f32 %v2147_v4, %v2532_v44 }
 0x756   : > { %v1356_v11 = vmul.f32 %v2149_v5, %v2541_v24 }
 0x757   : > { %v1359_v16 = vpack.c.bf16 %v1355_v8, %v1353_v12 }
 0x758   : > { %v1360_v41 = vpack.c.bf16 %v1356_v11, %v1354_v10 }
 0x75a   : > { %1401 = vmatprep.mubr.bf16.mxu1 %v1360_v41 }
 0x75b   : > { %1402 = vmatmul.mubr.bf16.gmra.mxu1 %v1359_v16 }
 0x75c   : > { %1606 = vmatprep.mubr.bf16.mxu1 %v2223_v3 }
 0x813   : > { %v1919_v42 = vpop.f32.mrf.mxu1 }
 0x815   : > { %v1920_v17 = vpop.f32.mrf.mxu1 }
 0x816   : > { %v1921_v18 = vadd.f32 %v1920_v17, %v1919_v42 }
 0x817   : > { %v1922_v20 = vpop.f32.mrf.mxu1 }
 0x818   : > { %v1396_v21 = vadd.f32 1e-12, %v1921_v18 }
 0x819   : > { %v1923_v22 = vpop.f32.mrf.mxu1 }
 0x81a   : > { %v1924_v25 = vadd.f32 %v1923_v22, %v1922_v20  ;;  %2150 = vrcp.f32 %v1396_v21 }
 0x81b   : > { %v1925_v47 = vpop.f32.mrf.mxu1 }
 0x81c   : > { %v1399_v48 = vadd.f32 1e-12, %v1924_v25 }
 0x81d   : > { %v1926_v26 = vpop.f32.mrf.mxu1 }
 0x81e   : > { %2152 = vrcp.f32 %v1399_v48  ;;  %v1927_v9 = vadd.f32 %v1926_v26, %v1925_v47  ;;  %v2009_v48 = vld [vmem:[%s2742_s6 + $0x4] ss:$8 sps:$4 sm:$0xff]  }
 0x81f   : > { %v1928_v27 = vpop.f32.mrf.mxu1  ;;  %1588 = vmatprep.subr.bf16.mxu1 %v2009_v48 }
 0x820   : > { %v1404_v28 = vadd.f32 1e-12, %v1927_v9 }
 0x821   : > { %v1929_v30 = vpop.f32.mrf.mxu1 }
 0x822   : > { %v1930_v33 = vadd.f32 %v1929_v30, %v1928_v27  ;;  %2154 = vrcp.f32 %v1404_v28 }
 0x824   : > { %v1407_v13 = vadd.f32 1e-12, %v1930_v33 }
 0x826   : > { %2156 = vrcp.f32 %v1407_v13 }
 0x827   : > { %v2151_v34 = vpop.eup %2150 }
 0x828   : > { %v1414_v36 = vmul.f32 %v2151_v34, %v2552_v52 }
 0x82b   : > { %v2153_v35 = vpop.eup %2152 }
 0x82c   : > { %v1415_v37 = vmul.f32 %v2153_v35, %v2550_v51 }
 0x82e   : > { %v1418_v38 = vpack.c.bf16 %v1415_v37, %v1414_v36 }
 0x82f   : > { %v2155_v29 = vpop.eup %2154 }
 0x830   : > { %1802 = vmatmul.mubr.msk.bf16.vlgmr.msra.gmra.mxu0 %vm774_vm14, %v1418_v38  ;;  %v1416_v40 = vmul.f32 %v2155_v29, %v2556_v32 }
 0x831   : > { %1468 = vmatprep.mubr.bf16.mxu0 %v2223_v3  ;;  %1932 = vmatpush3.bf16.msra.mxu0 %v2394_v14 }
 0x832   : > { %1933 = vmatprep.subr.bf16.mxu0 %v2403_v15 }
 0x833   : > { %v2157_v39 = vpop.eup %2156 }
 0x834   : > { %v1417_v43 = vmul.f32 %v2157_v39, %v2554_v31 }
 0x835   : > { %1934 = vmatpush3.bf16.msra.mxu0 %v2429_v50 }
 0x836   : > { %v1419_v46 = vpack.c.bf16 %v1417_v43, %v1416_v40  ;;  %1935 = vmatprep.subr.bf16.mxu0 %v2439_v53 }
 0x838   : > { %1803 = vmatmul.mubr.msk.bf16.gmra.mxu0 %vm774_vm14, %v1419_v46 }
 0x839   : > { %1936 = vmatpush3.bf16.msra.mxu0 %v2446_v55 }
 0x83a   : > { %1937 = vmatprep.subr.bf16.mxu0 %v2453_v56 }
 0x83d   : > { %1938 = vmatpush3.bf16.msra.mxu0 %v2458_v57 }
 0x83e   : > { %1939 = vmatprep.subr.bf16.mxu0 %v2465_v58 }
 0x841   : > { %1940 = vmatpush3.bf16.msra.mxu0 %v2470_v59 }
 0x842   : > { %1941 = vmatprep.subr.bf16.mxu0 %v2477_v60 }
 0x845   : > { %1942 = vmatpush3.bf16.msra.mxu0 %v2482_v61 }
 0x846   : > { %1943 = vmatprep.subr.bf16.mxu0 %v2489_v62 }
 0x849   : > { %1944 = vmatpush3.bf16.msra.mxu0 %v2494_v63 }
 0x84a   : > { %1945 = vmatprep.subr.bf16.mxu0 %v2501_v0 }
 0x84d   : > { %1946 = vmatpush3.bf16.msra.mxu0 %v2506_v1 }
 0x8f0   : > { %v1460_v14 = vpop.f32.mrf.mxu0 }
 0x8f1   : > { %v1461_v53 = vadd.f32 1e-12, %v1460_v14 }
 0x8f2   : > { %v1462_v15 = vpop.f32.mrf.mxu0 }
 0x8f3   : > { %v1463_v50 = vadd.f32 1e-12, %v1462_v15 }
 0x8f4   : > { %v1464_v55 = vpop.f32.mrf.mxu0 }
 0x8f5   : > { %v1465_v56 = vadd.f32 1e-12, %v1464_v55  ;;  %2158 = vrcp.f32 %v1463_v50 }
 0x8f6   : > { %v1466_v57 = vpop.f32.mrf.mxu0 }
 0x8f7   : > { %2160 = vrcp.f32 %v1465_v56  ;;  %v1467_v58 = vadd.f32 1e-12, %v1466_v57 }
 0x8f8   : > { %2162 = vrcp.f32 %v1461_v53  ;;  %v1470_v59 = vpop.f32.mrf.mxu0 }
 0x8f9   : > { %2164 = vrcp.f32 %v1467_v58  ;;  %v1471_v62 = vadd.f32 1e-12, %v1470_v59 }
 0x8fa   : > { %v1472_v60 = vpop.f32.mrf.mxu0 }
 0x8fb   : > { %v1473_v61 = vadd.f32 1e-12, %v1472_v60 }
 0x8fc   : > { %v1474_v63 = vpop.f32.mrf.mxu0 }
 0x8fd   : > { %v1475_v0 = vadd.f32 1e-12, %v1474_v63  ;;  %2166 = vrcp.f32 %v1473_v61 }
 0x8fe   : > { %v1476_v1 = vpop.f32.mrf.mxu0 }
 0x8ff   : > { %2168 = vrcp.f32 %v1475_v0  ;;  %v1477_v49 = vadd.f32 1e-12, %v1476_v1 }
 0x900   : > { %2170 = vrcp.f32 %v1471_v62 }
 0x901   : > { %2172 = vrcp.f32 %v1477_v49 }
 0x902   : > { %v2159_v4 = vpop.eup %2158 }
 0x903   : > { %v1488_v12 = vmul.f32 %v2159_v4, %v2519_v2 }
 0x904   : > { %v2161_v5 = vpop.eup %2160 }
 0x905   : > { %v2163_v8 = vpop.eup %2162  ;;  %v2680_v11 = vmul.f32 %v2161_v5, %v2522_v6 }
 0x906   : > { %v2165_v10 = vpop.eup %2164  ;;  %v1487_v16 = vmul.f32 %v2163_v8, %v2516_v54 }
 0x907   : > { %v2684_v41 = vmul.f32 %v2165_v10, %v2525_v7 }
 0x908   : > { %v1495_v17 = vpack.c.bf16 %v2680_v11, %v1487_v16 }
 0x909   : > { %v1496_v42 = vpack.c.bf16 %v2684_v41, %v1488_v12 }
 0x90a   : > { %v2167_v18 = vpop.eup %2166 }
 0x90b   : > { %1531 = vmatprep.mubr.bf16.mxu0 %v1496_v42  ;;  %v1492_v2 = vmul.f32 %v2167_v18, %v2535_v45 }
 0x90c   : > { %v2169_v20 = vpop.eup %2168  ;;  %1532 = vmatmul.mubr.bf16.vlgmr.msra.gmra.mxu0 %v1495_v17  ;;  %v2183_v17 = vld [vmem:[%s2298_s20] sm:$0xff] }
 0x90d   : > { %v2171_v21 = vpop.eup %2170  ;;  %v2690_v6 = vmul.f32 %v2169_v20, %v2538_v23  ;;  %v2007_v23 = vld [vmem:[%s2742_s6] ss:$8 sps:$4 sm:$0xff]  }
 0x90e   : > { %v2173_v22 = vpop.eup %2172  ;;  %v1491_v54 = vmul.f32 %v2171_v21, %v2532_v44  ;;  %1589 = vmatpush1.bf16.msra.mxu1 %v2007_v23 }
 0x90f   : > { %v2694_v7 = vmul.f32 %v2173_v22, %v2541_v24  ;;  %v2184_v22 = vld [vmem:[%s2298_s20 + $0x10] sm:$0xff] }
 0x910   : > { %v1497_v47 = vpack.c.bf16 %v2690_v6, %v1491_v54 }
 0x911   : > { %v1498_v25 = vpack.c.bf16 %v2694_v7, %v1492_v2 }
 0x913   : > { %1539 = vmatprep.mubr.bf16.mxu0 %v1498_v25 }
 0x914   : > { %1540 = vmatmul.mubr.bf16.gmra.mxu0 %v1497_v47  ;;  %v2185_v47 = vld [vmem:[%s2298_s20 + $0x18] sm:$0xff] }
 0x9cc   : > { %v1947_v45 = vpop.f32.mrf.mxu0 }
 0x9ce   : > { %v1948_v24 = vpop.f32.mrf.mxu0 }
 0x9cf   : > { %v1949_v26 = vadd.f32 %v1948_v24, %v1947_v45 }
 0x9d0   : > { %v1950_v44 = vpop.f32.mrf.mxu0 }
 0x9d1   : > { %v1534_v9 = vadd.f32 1e-12, %v1949_v26 }
 0x9d2   : > { %v1951_v27 = vpop.f32.mrf.mxu0 }
 0x9d3   : > { %v1952_v28 = vadd.f32 %v1951_v27, %v1950_v44  ;;  %2174 = vrcp.f32 %v1534_v9 }
 0x9d4   : > { %v1953_v30 = vpop.f32.mrf.mxu0 }
 0x9d5   : > { %v1537_v33 = vadd.f32 1e-12, %v1952_v28 }
 0x9d6   : > { %v1954_v13 = vpop.f32.mrf.mxu0 }
 0x9d7   : > { %2176 = vrcp.f32 %v1537_v33  ;;  %v1955_v34 = vadd.f32 %v1954_v13, %v1953_v30 }
 0x9d8   : > { %v1956_v35 = vpop.f32.mrf.mxu0 }
 0x9d9   : > { %v1542_v36 = vadd.f32 1e-12, %v1955_v34 }
 0x9da   : > { %v1957_v37 = vpop.f32.mrf.mxu0 }
 0x9db   : > { %v1958_v38 = vadd.f32 %v1957_v37, %v1956_v35  ;;  %2178 = vrcp.f32 %v1542_v36 }
 0x9dd   : > { %v1545_v29 = vadd.f32 1e-12, %v1958_v38 }
 0x9df   : > { %2180 = vrcp.f32 %v1545_v29 }
 0x9e0   : > { %v2175_v39 = vpop.eup %2174 }
 0x9e1   : > { %v1552_v43 = vmul.f32 %v2175_v39, %v2552_v52 }
 0x9e4   : > { %v2177_v40 = vpop.eup %2176 }
 0x9e5   : > { %v1553_v46 = vmul.f32 %v2177_v40, %v2550_v51  ;;  %v1665_v40 = vld [vmem:[#allocation2] sm:$0x1] }
 0x9e7   : > { %v1556_v14 = vpack.c.bf16 %v1553_v46, %v1552_v43 }
 0x9e8   : > { %v2179_v15 = vpop.eup %2178 }
 0x9e9   : > { %1806 = vmatmul.mubr.msk.bf16.vlgmr.msra.gmra.mxu1 %vm774_vm14, %v1556_v14  ;;  %v1554_v53 = vmul.f32 %v2179_v15, %v2556_v32 }
 0x9ea   : > { %1616 = vmatprep.mubr.bf16.mxu1 %v2223_v3 }
 0x9ec   : > { %v2181_v50 = vpop.eup %2180 }
 0x9ed   : > { %v1555_v55 = vmul.f32 %v2181_v50, %v2554_v31 }
 0x9ef   : > { %v1557_v56 = vpack.c.bf16 %v1555_v55, %v1554_v53 }
 0x9f1   : > { %1807 = vmatmul.mubr.msk.bf16.gmra.mxu1 %vm774_vm14, %v1557_v56 }
 0xaa9   : > { %v1608_v57 = vpop.f32.mrf.mxu1 }
 0xaaa   : > { %v1627_v59 = vmul.f32 %v1608_v57, %v1487_v16  ;;  %v2182_v16 = vld [vmem:[%s2298_s20 + $0x8] sm:$0xff]  ;;  %s2226_s20 = smov [#allocation2]  }
 0xaab   : > { %v1610_v58 = vpop.f32.mrf.mxu1  ;;  %s1679_s22 = sshll.u32 %s2226_s20, 4  ;;  %s1680_s22 = int_to_ptr.vmem [resolvable:$true] %s1679_s22 }
 0xaac   : > { %v1628_v52 = vmul.f32 %v1610_v58, %v1488_v12  ;;  %s2186_s23 = scalar_lea.vmem %s1680_s22, 16  ;;  %s2192_s26 = scalar_lea.vmem %s1680_s22, 32 }
 0xaad   : > { %v1612_v60 = vpop.f32.mrf.mxu1  ;;  %p2187_p7 = scmp.ne.s32.totalorder %s1680_s22, %s2186_s23  ;;  %p2193_p10 = scmp.lt.s32.totalorder %s1680_s22, %s1680_s22 }
 0xaae   : > { %v1635_v51 = vadd.f32 %v1628_v52, %v1627_v59  ;;  %v1629_v62 = vmul.f32 %v1612_v60, %v2680_v11  ;;  %p2194_p11 = scmp.lt.s32.totalorder %s2192_s26, %s2186_s23 }
 0xaaf   : > { %v1614_v61 = vpop.f32.mrf.mxu1  ;;  %p2188_p8 = pnand %p2187_p7, %p1971_p6 }
 0xab0   : > { %v1630_v63 = vmul.f32 %v1614_v61, %v2684_v41  ;;  %1636 = vadd.xlane.f32.xlu0 %v1635_v51  ;;  %p2195_p12 = por %p2194_p11, %p2193_p10 }
 0xab1   : > { %v1618_v3 = vpop.f32.mrf.mxu1  ;;  %p2189_p9 = pneg %p2188_p8 }
 0xab2   : > { %v1638_v0 = vadd.f32 %v1630_v63, %v1629_v62  ;;  %v1631_v31 = vmul.f32 %v1618_v3, %v1491_v54 }
 0xab3   : > { %v1620_v32 = vpop.f32.mrf.mxu1  ;;  %p2196_p13 = pnand %p2195_p12, %p2189_p9 }
 0xab4   : > { %v1632_v1 = vmul.f32 %v1620_v32, %v1492_v2  ;;  %1639 = vadd.xlane.f32.xlu0 %v1638_v0 }
 0xab5   : > { %v1622_v49 = vpop.f32.mrf.mxu1 }
 0xab6   : > { %v1641_v4 = vadd.f32 %v1632_v1, %v1631_v31  ;;  %v1633_v8 = vmul.f32 %v1622_v49, %v2690_v6 }
 0xab7   : > { %v1624_v5 = vpop.f32.mrf.mxu1 }
 0xab8   : > { %v1634_v10 = vmul.f32 %v1624_v5, %v2694_v7  ;;  %1642 = vadd.xlane.f32.xlu0 %v1641_v4 }
 0xaba   : > { %v1644_v11 = vadd.f32 %v1634_v10, %v1633_v8 }
 0xabc   : > { %1645 = vadd.xlane.f32.xlu0 %v1644_v11 }
 0xac0   : > { %557 = vadd.xlane.f32.xlu0 %v2513_v19 }
 0xb39   : > { %v1637_v12 = vpop.xlane.xlu0 %1636 }
 0xb3a   : > { %v1647_v18 = vmul.f32 %v2183_v17, %v1637_v12 }
 0xb3c   : > { %v1652_v6 = vsel %vm1651_vm0, %v1647_v18, 0.0 }
 0xb3d   : > { %v1640_v41 = vpop.xlane.xlu0 %1639 }
 0xb3e   : > { %v1648_v42 = vmul.f32 %v2182_v16, %v1640_v41 }
 0xb40   : > { %v1653_v21 = vsel %vm1651_vm0, %v1648_v42, 0.0 }
 0xb41   : > { %v1643_v20 = vpop.xlane.xlu0 %1642  ;;  %v1654_v7 = vadd.f32 %v1653_v21, %v1652_v6 }
 0xb42   : > { %v1649_v2 = vmul.f32 %v2184_v22, %v1643_v20 }
 0xb44   : > { %v1655_v54 = vsel %vm1651_vm0, %v1649_v2, 0.0 }
 0xb45   : > { %v1646_v25 = vpop.xlane.xlu0 %1645  ;;  %v1656_v23 = vadd.f32 %v1655_v54, %v1654_v7 }
 0xb46   : > { %v1650_v48 = vmul.f32 %v2185_v47, %v1646_v25 }
 0xb48   : > { %v1657_v19 = vsel %vm1651_vm0, %v1650_v48, 0.0 }
 0xb49   : > { %v1658_v45 = vadd.f32 %v1657_v19, %v1656_v23  ;;  %v558_v24 = vpop.xlane.xlu0 %557 }
 0xb4a   : > { %v559_v26 = vsub.f32 0.0, %v558_v24 }
 0xb4b   : > { %v1659_v44 = vrot.slane %v1658_v45, 4 }
 0xb4c   : > { %v560_v9 = vrot.slane %v559_v26, 4 }
 0xb4d   : > { %v1660_v27 = vadd.f32 %v1659_v44, %v1658_v45 }
 0xb4e   : > { %v561_v28 = vadd.f32 %v560_v9, %v559_v26 }
 0xb4f   : > { %v1661_v30 = vrot.slane %v1660_v27, 2 }
 0xb50   : > { %v562_v33 = vrot.slane %v561_v28, 2 }
 0xb51   : > { %v1662_v13 = vadd.f32 %v1661_v30, %v1660_v27 }
 0xb52   : > { %v563_v34 = vadd.f32 %v562_v33, %v561_v28 }
 0xb53   : > { %v1663_v35 = vrot.slane %v1662_v13, 1 }
 0xb54   : > { %v564_v36 = vrot.slane %v563_v34, 1 }
 0xb55   : > { %v1664_v37 = vadd.f32 %v1663_v35, %v1662_v13 }
 0xb56   : > { %v565_v38 = vadd.f32 %v564_v36, %v563_v34 }
 0xb57   : > { %v1666_v29 = vmul.f32 0.1, %v1664_v37 }
 0xb59   : > { %v1667_v39 = vadd.f32 %v1666_v29, %v565_v38 }
 0xb5b   : > { %v1668_v43 = vmul.f32 0.0625, %v1667_v39 }
 0xb5d   : > { %v1669_v46 = vadd.f32 %v1668_v43, %v1665_v40 }
 0xb5f   : > { %1671 = vst.msk [vmem:[#allocation2] sm:$0x1] %vm1670_vm1, %v1669_v46 }
 0xb60   : > { %2199 = shalt.err (!%p2196_p13)
}
 0xb61   : > { %1968 = dma.vmem_to_hbm [thread:$0]  (%p1971_p6), %s1680_s22, 16, %s2743_s7, [#allocation3]  }
 0xb62   : > { %2215 = dma.done.wait (%p1971_p6), [#allocation3], 16  }
 0xb63   : > { %2217 = vsyncadd (%p1971_p6), [#allocation3], 4294967280 }
 0xb64 PF: > { %s18_s24 = sadd.s32 1, %s2220_s24  }
 0xb65   : > { %p15_p0 = scmp.ge.s32.totalorder %s18_s24, 4  }
 0xb67   :  { %17 = sbr.rel (!%p15_p0) target bundleno = 1 (0x1), region = 88 }
 0xb6c   :  { %1692 = vsyncpa [#allocation3], 1 }
 0xb6d   :  { %1694 = vsyncpa [#allocation3 + $0x1], 1 }

</bundles_post_ra>
